<compile_context>
chip_gen: v5e
topology: v5e:2x2
jax: 0.10.0
libtpu: 0.0.40
codegen_flags: <defaults>
</compile_context>

<pallas_src>
import jax
import jax.numpy as jnp
import numpy as np
from jax.experimental import pallas as pl
from jax.experimental.pallas import tpu as pltpu


# --------------------------- fused forward kernel ---------------------------
def _fused_attn_bn_kernel(x_ref, gamma_ref, beta_ref, sel_ref,
                          y_ref, attn_ref, ctx_scratch):
    B, C, S = x_ref.shape            # [batch, hid_dim, H*W]
    P = B * S                        # packed context rows (n_heads == 1)

    # ---- per-batch block-diagonal attention (Q = K = V = x^T, no projections) ----
    for b in range(B):
        xbt = x_ref[b].astype(jnp.float32).T                    # [S, C]  (XLU, slot-free)
        energy = jax.lax.dot_general(                            # [S, S] = Q @ K^T  (NT)
            xbt, xbt, (((1,), (1,)), ((), ())),
            preferred_element_type=jnp.float32)
        # softmax(dim=-1), numerically stable
        m = jnp.max(energy, axis=-1, keepdims=True)
        p = jnp.exp(energy - m)
        denom = jnp.sum(p, axis=-1, keepdims=True)
        inv = pl.reciprocal(denom, approx=True)                  # EUP: keeps divide off VALU
        inv = inv * (2.0 - denom * inv)                          # one Newton step -> f32 accuracy
        attn = p * inv                                           # [S, S]
        attn_ref[b, 0] = attn.astype(attn_ref.dtype)             # direct per-batch store
        # context rows land directly in flat [B, S, C] order (packed [P, C]).
        ctx_scratch[b * S:(b + 1) * S, :] = jnp.dot(
            attn, xbt, preferred_element_type=jnp.float32)       # [S, C]

    ctx = ctx_scratch[...]                                       # [P, C]

    # ---- PyTorch raw `x.view(B, hid_dim, H, W)` + BatchNorm2d (biased batch stats) ---
    # The raw row-major reinterpretation maps every packed row p of ctx to a single
    # BN channel chan(p) = (p % S) // (S // C); sel_ref holds that one-hot [P, C]
    # map (host-precomputed constant, no in-kernel iota/compare).
    sel = sel_ref[...]                                           # [P, C]
    inv_n = jnp.float32(1.0 / P)                                 # elems per channel = B*H*W

    row_sum = jnp.sum(ctx, axis=-1, keepdims=True)               # [P, 1]
    mean_c = jnp.sum(sel * row_sum, axis=0, keepdims=True) * inv_n        # [1, C] lane-major
    mean_p = jnp.sum(sel * mean_c, axis=-1, keepdims=True)                # [P, 1]
    diff = ctx - mean_p
    d2_sum = jnp.sum(diff * diff, axis=-1, keepdims=True)                 # [P, 1]
    var_c = jnp.sum(sel * d2_sum, axis=0, keepdims=True) * inv_n          # [1, C] lane-major
    scale_c = jax.lax.rsqrt(var_c + 1e-5) * gamma_ref[...]                # [1, C]
    scale_p = jnp.sum(sel * scale_c, axis=-1, keepdims=True)              # [P, 1]
    beta_p = jnp.sum(sel * beta_ref[...], axis=-1, keepdims=True)         # [P, 1]
    # TODO(synk): y is only 32 lanes wide (masked vst); if shapes grow, emit a
    # lane-dense slab and reshape in the wrapper.
    y_ref[...] = (diff * scale_p + beta_p).astype(y_ref.dtype)


# ------------------------------- full forward --------------------------------
def self_attention_block_forward(x_nchw, gamma, beta, n_heads=1):
    """Forward of SelfAttentionBlock (training-mode BatchNorm batch statistics)."""
    B, C, H, W = x_nchw.shape
    S = H * W
    P = B * S
    if n_heads != 1:
        # TODO(synk): multi-head packing needs an in-kernel head split (minor-dim
        # reshape); the module default n_heads=1 is what is implemented here.
        raise NotImplementedError("fused kernel implements n_heads == 1")
    if S % C != 0:
        # TODO(synk): general raw-view channel mapping (S % C != 0) needs a true
        # in-kernel reshape; not required for the tested configuration.
        raise NotImplementedError("fused kernel assumes (H*W) % hid_dim == 0")

    x_bcs = x_nchw.astype(jnp.float32).reshape(B, C, S)          # free bitcast reshape
    gamma_r = gamma.astype(jnp.float32).reshape(1, C)            # lane-major channel vecs
    beta_r = beta.astype(jnp.float32).reshape(1, C)

    # Host-precomputed one-hot BN-channel map of the raw `view`:
    # packed row p (flat [B, S, C] order) -> channel (p % S) // (S // C).
    r = S // C
    chan = (np.arange(P) % S) // r
    sel_pc = jnp.asarray((chan[:, None] == np.arange(C)[None, :]).astype(np.float32))

    flops = B * 2 * (2 * S * S * C)              # per-batch energy + context matmuls
    flops += 10 * P * C                          # BN stats / normalize VPU passes
    cost = pl.CostEstimate(
        flops=flops,
        transcendentals=B * S * S + B * S + C,   # exp + reciprocal + rsqrt
        bytes_accessed=4 * (B * C * S + 2 * C + P * C      # x, gamma/beta, selector
                            + P * C + B * S * S))          # y, attention maps

    y_flat, attn = pl.pallas_call(
        _fused_attn_bn_kernel,
        out_shape=(jax.ShapeDtypeStruct((P, C), jnp.float32),
                   jax.ShapeDtypeStruct((B, n_heads, S, S), jnp.float32)),
        grid=(1,),
        in_specs=[pl.BlockSpec((B, C, S), lambda i: (0, 0, 0)),
                  pl.BlockSpec((1, C), lambda i: (0, 0)),
                  pl.BlockSpec((1, C), lambda i: (0, 0)),
                  pl.BlockSpec((P, C), lambda i: (0, 0))],
        out_specs=(pl.BlockSpec((P, C), lambda i: (0, 0)),
                   pl.BlockSpec((B, n_heads, S, S), lambda i: (0, 0, 0, 0))),
        scratch_shapes=[pltpu.VMEM((P, C), jnp.float32)],
        compiler_params=pltpu.CompilerParams(dimension_semantics=("arbitrary",)),
        cost_estimate=cost,
    )(x_bcs, gamma_r, beta_r, sel_pc)

    # PyTorch `x.view(batch, hid_dim, H, W)` is a raw row-major reinterpretation of
    # the [B, S, C] context; y_flat is already in that flat order -> free bitcast.
    y = y_flat.reshape(B, C, H, W)
    return y, attn


if __name__ == "__main__":
    # position = 5 -> img_size = 256 // 2**5 = 8, seq_len = 64 ; hid_dim = 32, n_heads = 1
    B, hid_dim, img = 2, 32, 8
    key = jax.random.PRNGKey(0)
    kx, kg, kb = jax.random.split(key, 3)
    x = jax.random.normal(kx, (B, hid_dim, img, img), dtype=jnp.float32)
    # deterministic BatchNorm affine params (pos_embedding unused: add_pos=False)
    gamma = 1.0 + 0.1 * jax.random.normal(kg, (hid_dim,), dtype=jnp.float32)
    beta = 0.1 * jax.random.normal(kb, (hid_dim,), dtype=jnp.float32)

    y, attn = jax.jit(self_attention_block_forward)(x, gamma, beta)
    jax.block_until_ready((y, attn))

    # pure-JAX reference (same math as the PyTorch forward, training-mode BN)
    def ref(x, gamma, beta):
        Bq, C, H, W = x.shape
        S = H * W
        xs = jnp.transpose(x.reshape(Bq, C, S), (0, 2, 1))          # [B, S, D]
        q = xs[:, None]                                              # [B, 1, S, D]
        e = jnp.einsum('bhsd,bhtd->bhst', q, q)
        a = jax.nn.softmax(e, axis=-1)
        c = jnp.einsum('bhst,bhtd->bhsd', a, q)
        c = jnp.transpose(c, (0, 2, 1, 3)).reshape(Bq, S, C)
        xb = c.reshape(Bq, C, H, W)                                  # raw `view`
        mean = xb.mean(axis=(0, 2, 3), keepdims=True)
        var = ((xb - mean) ** 2).mean(axis=(0, 2, 3), keepdims=True)
        yb = (xb - mean) / jnp.sqrt(var + 1e-5) * gamma[None, :, None, None] \
             + beta[None, :, None, None]
        return yb, a

    y_want, attn_want = ref(x, gamma, beta)
    np.testing.assert_allclose(np.asarray(attn), np.asarray(attn_want),
                               atol=5e-4, rtol=5e-4)
    np.testing.assert_allclose(np.asarray(y), np.asarray(y_want),
                               atol=2e-3, rtol=2e-3)
    print("KERNEL_OK")
</pallas_src>

<mosaic_0001>
module attributes {stable_mosaic.version = 11 : i64} {
  func.func @_fused_attn_bn_kernel(%arg0: i32, %arg1: memref<2x32x64xf32, #tpu.memory_space<vmem>>, %arg2: memref<1x32xf32, #tpu.memory_space<vmem>>, %arg3: memref<1x32xf32, #tpu.memory_space<vmem>>, %arg4: memref<128x32xf32, #tpu.memory_space<vmem>>, %arg5: memref<128x32xf32, #tpu.memory_space<vmem>>, %arg6: memref<2x1x64x64xf32, #tpu.memory_space<vmem>>, %arg7: memref<128x32xf32, #tpu.memory_space<vmem>>) attributes {dimension_semantics = [#tpu.dimension_semantics<arbitrary>], iteration_bounds = array<i64: 1>, scalar_prefetch = 0 : i64, scratch_operands = 1 : i64, tpu.core_type = #tpu.core_type<tc>, window_params = [{pipeline_mode = #tpu.pipeline_mode<synchronous>, transform_indices = @transform_0, window_bounds = array<i64: 2, 32, 64>}, {pipeline_mode = #tpu.pipeline_mode<synchronous>, transform_indices = @transform_1, window_bounds = array<i64: 1, 32>}, {pipeline_mode = #tpu.pipeline_mode<synchronous>, transform_indices = @transform_2, window_bounds = array<i64: 1, 32>}, {pipeline_mode = #tpu.pipeline_mode<synchronous>, transform_indices = @transform_3, window_bounds = array<i64: 128, 32>}, {pipeline_mode = #tpu.pipeline_mode<synchronous>, transform_indices = @transform_4, window_bounds = array<i64: 128, 32>}, {pipeline_mode = #tpu.pipeline_mode<synchronous>, transform_indices = @transform_5, window_bounds = array<i64: 2, 1, 64, 64>}]} {
    %c0 = arith.constant 0 : index
    %c0_0 = arith.constant 0 : index
    %c0_1 = arith.constant 0 : index
    %0 = vector.load %arg1[%c0, %c0_0, %c0_1] : memref<2x32x64xf32, #tpu.memory_space<vmem>>, vector<1x32x64xf32>
    %1 = vector.shape_cast %0 : vector<1x32x64xf32> to vector<32x64xf32>
    %2 = tpu.transpose %1, [1, 0] : vector<32x64xf32> -> vector<64x32xf32>
    %cst = arith.constant dense<0.000000e+00> : vector<64x64xf32>
    %3 = tpu.matmul %2, %2, %cst {dimension_numbers = #tpu.dot_dimension_numbers<[1], [1], [0], [0], [0, 0, 1, 0], [], []>} : vector<64x32xf32>, vector<64x32xf32>, vector<64x64xf32> -> vector<64x64xf32>
    %cst_2 = arith.constant dense<0xFF800000> : vector<64xf32>
    %4 = vector.multi_reduction <maximumf>, %3, %cst_2 [1] : vector<64x64xf32> to vector<64xf32>
    %5 = vector.shape_cast %4 : vector<64xf32> to vector<64x1xf32>
    %6 = vector.broadcast %5 : vector<64x1xf32> to vector<64x64xf32>
    %7 = arith.subf %3, %6 : vector<64x64xf32>
    %8 = math.exp %7 : vector<64x64xf32>
    %cst_3 = arith.constant dense<0.000000e+00> : vector<64xf32>
    %9 = vector.multi_reduction <add>, %8, %cst_3 [1] : vector<64x64xf32> to vector<64xf32>
    %10 = vector.shape_cast %9 : vector<64xf32> to vector<64x1xf32>
    %11 = tpu.reciprocal %10 {approx = true} : vector<64x1xf32> -> vector<64x1xf32>
    %12 = arith.mulf %10, %11 : vector<64x1xf32>
    %cst_4 = arith.constant 2.000000e+00 : f32
    %13 = vector.broadcast %cst_4 : f32 to vector<64x1xf32>
    %14 = arith.subf %13, %12 : vector<64x1xf32>
    %15 = arith.mulf %11, %14 : vector<64x1xf32>
    %16 = vector.broadcast %15 : vector<64x1xf32> to vector<64x64xf32>
    %17 = arith.mulf %8, %16 : vector<64x64xf32>
    %c0_5 = arith.constant 0 : index
    %c0_6 = arith.constant 0 : index
    %c0_7 = arith.constant 0 : index
    %c0_8 = arith.constant 0 : index
    %18 = vector.load %arg6[%c0_5, %c0_6, %c0_7, %c0_8] : memref<2x1x64x64xf32, #tpu.memory_space<vmem>>, vector<1x1x64x64xf32>
    %19 = vector.shape_cast %18 : vector<1x1x64x64xf32> to vector<64x64xf32>
    %20 = vector.shape_cast %17 : vector<64x64xf32> to vector<1x1x64x64xf32>
    tpu.vector_store %arg6[%c0_5, %c0_6, %c0_7, %c0_8], %20 {strides = array<i32>} : memref<2x1x64x64xf32, #tpu.memory_space<vmem>>, vector<1x1x64x64xf32>,
    %cst_9 = arith.constant dense<0.000000e+00> : vector<64x32xf32>
    %21 = tpu.matmul %17, %2, %cst_9 {dimension_numbers = #tpu.dot_dimension_numbers<[1], [0], [0], [1], [0, 0, 1, 1], [], []>} : vector<64x64xf32>, vector<64x32xf32>, vector<64x32xf32> -> vector<64x32xf32>
    %c0_10 = arith.constant 0 : index
    %c0_11 = arith.constant 0 : index
    %22 = vector.load %arg7[%c0_10, %c0_11] : memref<128x32xf32, #tpu.memory_space<vmem>>, vector<64x32xf32>
    tpu.vector_store %arg7[%c0_10, %c0_11], %21 {strides = array<i32>} : memref<128x32xf32, #tpu.memory_space<vmem>>, vector<64x32xf32>,
    %c1 = arith.constant 1 : index
    %c0_12 = arith.constant 0 : index
    %c0_13 = arith.constant 0 : index
    %23 = vector.load %arg1[%c1, %c0_12, %c0_13] : memref<2x32x64xf32, #tpu.memory_space<vmem>>, vector<1x32x64xf32>
    %24 = vector.shape_cast %23 : vector<1x32x64xf32> to vector<32x64xf32>
    %25 = tpu.transpose %24, [1, 0] : vector<32x64xf32> -> vector<64x32xf32>
    %cst_14 = arith.constant dense<0.000000e+00> : vector<64x64xf32>
    %26 = tpu.matmul %25, %25, %cst_14 {dimension_numbers = #tpu.dot_dimension_numbers<[1], [1], [0], [0], [0, 0, 1, 0], [], []>} : vector<64x32xf32>, vector<64x32xf32>, vector<64x64xf32> -> vector<64x64xf32>
    %cst_15 = arith.constant dense<0xFF800000> : vector<64xf32>
    %27 = vector.multi_reduction <maximumf>, %26, %cst_15 [1] : vector<64x64xf32> to vector<64xf32>
    %28 = vector.shape_cast %27 : vector<64xf32> to vector<64x1xf32>
    %29 = vector.broadcast %28 : vector<64x1xf32> to vector<64x64xf32>
    %30 = arith.subf %26, %29 : vector<64x64xf32>
    %31 = math.exp %30 : vector<64x64xf32>
    %cst_16 = arith.constant dense<0.000000e+00> : vector<64xf32>
    %32 = vector.multi_reduction <add>, %31, %cst_16 [1] : vector<64x64xf32> to vector<64xf32>
    %33 = vector.shape_cast %32 : vector<64xf32> to vector<64x1xf32>
    %34 = tpu.reciprocal %33 {approx = true} : vector<64x1xf32> -> vector<64x1xf32>
    %35 = arith.mulf %33, %34 : vector<64x1xf32>
    %cst_17 = arith.constant 2.000000e+00 : f32
    %36 = vector.broadcast %cst_17 : f32 to vector<64x1xf32>
    %37 = arith.subf %36, %35 : vector<64x1xf32>
    %38 = arith.mulf %34, %37 : vector<64x1xf32>
    %39 = vector.broadcast %38 : vector<64x1xf32> to vector<64x64xf32>
    %40 = arith.mulf %31, %39 : vector<64x64xf32>
    %c1_18 = arith.constant 1 : index
    %c0_19 = arith.constant 0 : index
    %c0_20 = arith.constant 0 : index
    %c0_21 = arith.constant 0 : index
    %41 = vector.load %arg6[%c1_18, %c0_19, %c0_20, %c0_21] : memref<2x1x64x64xf32, #tpu.memory_space<vmem>>, vector<1x1x64x64xf32>
    %42 = vector.shape_cast %41 : vector<1x1x64x64xf32> to vector<64x64xf32>
    %43 = vector.shape_cast %40 : vector<64x64xf32> to vector<1x1x64x64xf32>
    tpu.vector_store %arg6[%c1_18, %c0_19, %c0_20, %c0_21], %43 {strides = array<i32>} : memref<2x1x64x64xf32, #tpu.memory_space<vmem>>, vector<1x1x64x64xf32>,
    %cst_22 = arith.constant dense<0.000000e+00> : vector<64x32xf32>
    %44 = tpu.matmul %40, %25, %cst_22 {dimension_numbers = #tpu.dot_dimension_numbers<[1], [0], [0], [1], [0, 0, 1, 1], [], []>} : vector<64x64xf32>, vector<64x32xf32>, vector<64x32xf32> -> vector<64x32xf32>
    %c64 = arith.constant 64 : index
    %c0_23 = arith.constant 0 : index
    %45 = vector.load %arg7[%c64, %c0_23] : memref<128x32xf32, #tpu.memory_space<vmem>>, vector<64x32xf32>
    tpu.vector_store %arg7[%c64, %c0_23], %44 {strides = array<i32>} : memref<128x32xf32, #tpu.memory_space<vmem>>, vector<64x32xf32>,
    %c0_24 = arith.constant 0 : index
    %c0_25 = arith.constant 0 : index
    %46 = vector.load %arg7[%c0_24, %c0_25] : memref<128x32xf32, #tpu.memory_space<vmem>>, vector<128x32xf32>
    %c0_26 = arith.constant 0 : index
    %c0_27 = arith.constant 0 : index
    %47 = vector.load %arg4[%c0_26, %c0_27] : memref<128x32xf32, #tpu.memory_space<vmem>>, vector<128x32xf32>
    %cst_28 = arith.constant dense<0.000000e+00> : vector<128xf32>
    %48 = vector.multi_reduction <add>, %46, %cst_28 [1] : vector<128x32xf32> to vector<128xf32>
    %49 = vector.shape_cast %48 : vector<128xf32> to vector<128x1xf32>
    %50 = vector.broadcast %49 : vector<128x1xf32> to vector<128x32xf32>
    %51 = arith.mulf %47, %50 : vector<128x32xf32>
    %cst_29 = arith.constant dense<0.000000e+00> : vector<32xf32>
    %52 = vector.multi_reduction <add>, %51, %cst_29 [0] : vector<128x32xf32> to vector<32xf32>
    %53 = vector.shape_cast %52 : vector<32xf32> to vector<1x32xf32>
    %cst_30 = arith.constant 7.812500e-03 : f32
    %54 = vector.broadcast %cst_30 : f32 to vector<1x32xf32>
    %55 = arith.mulf %53, %54 : vector<1x32xf32>
    %56 = vector.broadcast %55 : vector<1x32xf32> to vector<128x32xf32>
    %57 = arith.mulf %47, %56 : vector<128x32xf32>
    %cst_31 = arith.constant dense<0.000000e+00> : vector<128xf32>
    %58 = vector.multi_reduction <add>, %57, %cst_31 [1] : vector<128x32xf32> to vector<128xf32>
    %59 = vector.shape_cast %58 : vector<128xf32> to vector<128x1xf32>
    %60 = vector.broadcast %59 : vector<128x1xf32> to vector<128x32xf32>
    %61 = arith.subf %46, %60 : vector<128x32xf32>
    %62 = arith.mulf %61, %61 : vector<128x32xf32>
    %cst_32 = arith.constant dense<0.000000e+00> : vector<128xf32>
    %63 = vector.multi_reduction <add>, %62, %cst_32 [1] : vector<128x32xf32> to vector<128xf32>
    %64 = vector.shape_cast %63 : vector<128xf32> to vector<128x1xf32>
    %65 = vector.broadcast %64 : vector<128x1xf32> to vector<128x32xf32>
    %66 = arith.mulf %47, %65 : vector<128x32xf32>
    %cst_33 = arith.constant dense<0.000000e+00> : vector<32xf32>
    %67 = vector.multi_reduction <add>, %66, %cst_33 [0] : vector<128x32xf32> to vector<32xf32>
    %68 = vector.shape_cast %67 : vector<32xf32> to vector<1x32xf32>
    %cst_34 = arith.constant 7.812500e-03 : f32
    %69 = vector.broadcast %cst_34 : f32 to vector<1x32xf32>
    %70 = arith.mulf %68, %69 : vector<1x32xf32>
    %cst_35 = arith.constant 9.99999974E-6 : f32
    %71 = vector.broadcast %cst_35 : f32 to vector<1x32xf32>
    %72 = arith.addf %70, %71 : vector<1x32xf32>
    %73 = math.rsqrt %72 : vector<1x32xf32>
    %c0_36 = arith.constant 0 : index
    %c0_37 = arith.constant 0 : index
    %74 = vector.load %arg2[%c0_36, %c0_37] : memref<1x32xf32, #tpu.memory_space<vmem>>, vector<1x32xf32>
    %75 = arith.mulf %73, %74 : vector<1x32xf32>
    %76 = vector.broadcast %75 : vector<1x32xf32> to vector<128x32xf32>
    %77 = arith.mulf %47, %76 : vector<128x32xf32>
    %cst_38 = arith.constant dense<0.000000e+00> : vector<128xf32>
    %78 = vector.multi_reduction <add>, %77, %cst_38 [1] : vector<128x32xf32> to vector<128xf32>
    %79 = vector.shape_cast %78 : vector<128xf32> to vector<128x1xf32>
    %c0_39 = arith.constant 0 : index
    %c0_40 = arith.constant 0 : index
    %80 = vector.load %arg3[%c0_39, %c0_40] : memref<1x32xf32, #tpu.memory_space<vmem>>, vector<1x32xf32>
    %81 = vector.broadcast %80 : vector<1x32xf32> to vector<128x32xf32>
    %82 = arith.mulf %47, %81 : vector<128x32xf32>
    %cst_41 = arith.constant dense<0.000000e+00> : vector<128xf32>
    %83 = vector.multi_reduction <add>, %82, %cst_41 [1] : vector<128x32xf32> to vector<128xf32>
    %84 = vector.shape_cast %83 : vector<128xf32> to vector<128x1xf32>
    %85 = vector.broadcast %79 : vector<128x1xf32> to vector<128x32xf32>
    %86 = arith.mulf %61, %85 : vector<128x32xf32>
    %87 = vector.broadcast %84 : vector<128x1xf32> to vector<128x32xf32>
    %88 = arith.addf %86, %87 : vector<128x32xf32>
    %c0_42 = arith.constant 0 : index
    %c0_43 = arith.constant 0 : index
    %89 = vector.load %arg5[%c0_42, %c0_43] : memref<128x32xf32, #tpu.memory_space<vmem>>, vector<128x32xf32>
    tpu.vector_store %arg5[%c0_42, %c0_43], %88 {strides = array<i32>} : memref<128x32xf32, #tpu.memory_space<vmem>>, vector<128x32xf32>,
    return
  }
  func.func @transform_0(%arg0: i32) -> (i32, i32, i32) {
    %c0_i32 = arith.constant 0 : i32
    %c0_i32_0 = arith.constant 0 : i32
    %c0_i32_1 = arith.constant 0 : i32
    %c0_i32_2 = arith.constant 0 : i32
    return %c0_i32, %c0_i32_0, %c0_i32_1 : i32, i32, i32
  }
  func.func @transform_1(%arg0: i32) -> (i32, i32) {
    %c0_i32 = arith.constant 0 : i32
    %c0_i32_0 = arith.constant 0 : i32
    %c0_i32_1 = arith.constant 0 : i32
    return %c0_i32, %c0_i32_0 : i32, i32
  }
  func.func @transform_2(%arg0: i32) -> (i32, i32) {
    %c0_i32 = arith.constant 0 : i32
    %c0_i32_0 = arith.constant 0 : i32
    %c0_i32_1 = arith.constant 0 : i32
    return %c0_i32, %c0_i32_0 : i32, i32
  }
  func.func @transform_3(%arg0: i32) -> (i32, i32) {
    %c0_i32 = arith.constant 0 : i32
    %c0_i32_0 = arith.constant 0 : i32
    %c0_i32_1 = arith.constant 0 : i32
    return %c0_i32, %c0_i32_0 : i32, i32
  }
  func.func @transform_4(%arg0: i32) -> (i32, i32) {
    %c0_i32 = arith.constant 0 : i32
    %c0_i32_0 = arith.constant 0 : i32
    %c0_i32_1 = arith.constant 0 : i32
    return %c0_i32, %c0_i32_0 : i32, i32
  }
  func.func @transform_5(%arg0: i32) -> (i32, i32, i32, i32) {
    %c0_i32 = arith.constant 0 : i32
    %c0_i32_0 = arith.constant 0 : i32
    %c0_i32_1 = arith.constant 0 : i32
    %c0_i32_2 = arith.constant 0 : i32
    %c0_i32_3 = arith.constant 0 : i32
    return %c0_i32, %c0_i32_0, %c0_i32_1, %c0_i32_2 : i32, i32, i32, i32
  }
}

</mosaic_0001>

<bundles_post_ra>
// kernel: self_attention_block_forward.1
= control target key start
LH: loop header
LB: loop body
LE: loop exit
PB: predicated region body
PF: predicated region fallthrough
CT: control target
= control target key end

     0   :  { %s2097_s0 = inlined_call_operand.vmem [shape: f32[2,32,64], index: 0, kind: input, shape index: {}]   ;;  %s2098_s1 = inlined_call_operand.vmem [shape: f32[1,32], index: 1, kind: input, shape index: {}]   ;;  %s2099_s2 = inlined_call_operand.vmem [shape: f32[1,32], index: 2, kind: input, shape index: {}]   ;;  %s2100_s3 = inlined_call_operand.vmem [shape: f32[128,32], index: 3, kind: input, shape index: {}]   ;;  %s2101_s4 = inlined_call_operand.vmem [shape: f32[128,32], index: 4, kind: output, shape index: {0}]   ;;  %s2102_s5 = inlined_call_operand.hbm [shape: f32[2,1,64,64], index: 5, kind: output, shape index: {1}]  }
   0x1   :  { %v1184_v0 = vld [vmem:[%s2097_s0 + $0x20] sm:$0xff] }
   0x2   :  { %v20_v1 = vld [vmem:[%s2097_s0] sm:$0xff]  ;;  %321 = vxpose.xlu1.b32.start [1/4] (short) (narrow) %v1184_v0, 64 }
   0x3   :  { %24 = vxpose.xlu0.b32.start [1/4] (short) (narrow) %v20_v1, 64 }
   0x4   :  { %11 = vsyncpa [#allocation4], 0  ;;  %v1185_v2 = vld [vmem:[%s2097_s0 + $0x28] sm:$0xff]  ;;  %v1186_v4 = vld [vmem:[%s2097_s0 + $0x30] sm:$0xff]  ;;  %vm56_vm0 = vcmask 261120   ;;  %vm122_vm1 = vcmask 523264  }
   0x5   :  { %v21_v3 = vld [vmem:[%s2097_s0 + $0x8] sm:$0xff]  ;;  %v22_v5 = vld [vmem:[%s2097_s0 + $0x10] sm:$0xff]  ;;  %v1187_v6 = vld [vmem:[%s2097_s0 + $0x38] sm:$0xff]  ;;  %s1146_s17 = sshll.u32 %s2102_s5, 4  ;;  %s1309_s18 = smov [#allocation3]   ;;  %s1147_s17 = int_to_ptr.hbm [resolvable:$true] %s1146_s17 }
   0x6   :  { %v23_v7 = vld [vmem:[%s2097_s0 + $0x18] sm:$0xff]  ;;  %s1144_s19 = sshll.u32 %s1309_s18, 4  ;;  %s1310_s20 = smov 128   ;;  %s1145_s19 = int_to_ptr.vmem [resolvable:$true] %s1144_s19 }
   0x7   :  { %s1311_s21 = smov 8  }
   0xa   :  { %322 = vxpose.xlu1.b32.cont [2/4] (short) (narrow) %v1185_v2, 64 }
   0xb   :  { %25 = vxpose.xlu0.b32.cont [2/4] (short) (narrow) %v21_v3, 64 }
  0x12   :  { %323 = vxpose.xlu1.b32.cont [3/4] (short) (narrow) %v1186_v4, 64 }
  0x13   :  { %26 = vxpose.xlu0.b32.cont [3/4] (short) (narrow) %v22_v5, 64 }
  0x1a   :  { %324 = vxpose.xlu1.b32.end [4/4] (short) (narrow) %v1187_v6, 64 }
  0x1b   :  { %27 = vxpose.xlu0.b32.end [4/4] (short) (narrow) %v23_v7, 64 }
  0xa6   :  { %v337_v8 = vpop.trf.xlu1 }
  0xa7   :  { %v40_v9 = vpop.trf.xlu0 }
  0xae   :  { %v338_v10 = vpop.trf.xlu1 }
  0xaf   :  { %v41_v11 = vpop.trf.xlu0 }
  0xb6   :  { %v339_v12 = vpop.trf.xlu1 }
  0xb7   :  { %v42_v13 = vpop.trf.xlu0 }
  0xbe   :  { %v340_v14 = vpop.trf.xlu1 }
  0xbf   :  { %v43_v15 = vpop.trf.xlu0 }
  0xc6   :  { %v341_v16 = vpop.trf.xlu1 }
  0xc7   :  { %v44_v17 = vpop.trf.xlu0 }
  0xce   :  { %v342_v18 = vpop.trf.xlu1 }
  0xcf   :  { %v45_v19 = vpop.trf.xlu0 }
  0xd6   :  { %v343_v20 = vpop.trf.xlu1 }
  0xd7   :  { %v46_v21 = vpop.trf.xlu0 }
  0xde   :  { %v344_v22 = vpop.trf.xlu1 }
  0xdf   :  { %v47_v23 = vpop.trf.xlu0  ;;  %1188 = vmatpush.xpose.msk.msra.mxu2 %vm56_vm0, %v344_v22  ;;  %571 = vmatpush.msra.mxu3 %v344_v22 }
  0xe0   :  { %1160 = vmatpush.xpose.msk.msra.mxu0 %vm56_vm0, %v47_v23  ;;  %275 = vmatpush.msra.mxu1 %v47_v23 }
  0xe1   :  { %572 = vmatpush.msra.mxu3 %v343_v20 }
  0xe2   :  { %276 = vmatpush.msra.mxu1 %v46_v21 }
  0xe3   :  { %1189 = vmatpush.xpose.msk.msra.mxu2 %vm56_vm0, %v343_v20  ;;  %573 = vmatpush.msra.mxu3 %v342_v18 }
  0xe4   :  { %1161 = vmatpush.xpose.msk.msra.mxu0 %vm56_vm0, %v46_v21  ;;  %277 = vmatpush.msra.mxu1 %v45_v19 }
  0xe5   :  { %574 = vmatpush.msra.mxu3 %v341_v16 }
  0xe6   :  { %278 = vmatpush.msra.mxu1 %v44_v17 }
  0xe7   :  { %1190 = vmatpush.xpose.msk.msra.mxu2 %vm56_vm0, %v342_v18  ;;  %575 = vmatpush.msra.mxu3 %v340_v14 }
  0xe8   :  { %1162 = vmatpush.xpose.msk.msra.mxu0 %vm56_vm0, %v45_v19  ;;  %279 = vmatpush.msra.mxu1 %v43_v15 }
  0xe9   :  { %576 = vmatpush.msra.mxu3 %v339_v12 }
  0xea   :  { %280 = vmatpush.msra.mxu1 %v42_v13 }
  0xeb   :  { %1191 = vmatpush.xpose.msk.msra.mxu2 %vm56_vm0, %v341_v16  ;;  %577 = vmatpush.msra.mxu3 %v338_v10 }
  0xec   :  { %1163 = vmatpush.xpose.msk.msra.mxu0 %vm56_vm0, %v44_v17  ;;  %281 = vmatpush.msra.mxu1 %v41_v11 }
  0xed   :  { %578 = vmatpush.msra.mxu3 %v337_v8 }
  0xee   :  { %282 = vmatpush.msra.mxu1 %v40_v9 }
  0xef   :  { %1192 = vmatpush.xpose.msk.msra.mxu2 %vm56_vm0, %v340_v14 }
  0xf0   :  { %1164 = vmatpush.xpose.msk.msra.mxu0 %vm56_vm0, %v43_v15 }
  0xf3   :  { %1193 = vmatpush.xpose.msk.msra.mxu2 %vm56_vm0, %v339_v12 }
  0xf4   :  { %1165 = vmatpush.xpose.msk.msra.mxu0 %vm56_vm0, %v42_v13 }
  0xf7   :  { %1194 = vmatpush.xpose.msk.msra.mxu2 %vm56_vm0, %v338_v10 }
  0xf8   :  { %1166 = vmatpush.xpose.msk.msra.mxu0 %vm56_vm0, %v41_v11 }
  0xfb   :  { %1195 = vmatpush.xpose.msk.msra.mxu2 %vm56_vm0, %v337_v8 }
  0xfc   :  { %1167 = vmatpush.xpose.msk.msra.mxu0 %vm56_vm0, %v40_v9 }
  0xfe   :  { %1196 = vmatmul.msk.f32.vlgmr.msra.gmra.mxu2 %vm56_vm0, %v337_v8 }
  0xff   :  { %1168 = vmatmul.msk.f32.vlgmr.msra.gmra.mxu0 %vm56_vm0, %v40_v9 }
 0x106   :  { %1197 = vmatmul.msk.f32.gmra.mxu2 %vm56_vm0, %v338_v10 }
 0x107   :  { %1169 = vmatmul.msk.f32.gmra.mxu0 %vm56_vm0, %v41_v11 }
 0x10e   :  { %1198 = vmatmul.msk.f32.gmra.mxu2 %vm56_vm0, %v339_v12 }
 0x10f   :  { %1170 = vmatmul.msk.f32.gmra.mxu0 %vm56_vm0, %v42_v13 }
 0x116   :  { %1199 = vmatmul.msk.f32.gmra.mxu2 %vm56_vm0, %v340_v14 }
 0x117   :  { %1171 = vmatmul.msk.f32.gmra.mxu0 %vm56_vm0, %v43_v15 }
 0x11e   :  { %1200 = vmatmul.msk.f32.gmra.mxu2 %vm56_vm0, %v341_v16 }
 0x11f   :  { %1172 = vmatmul.msk.f32.gmra.mxu0 %vm56_vm0, %v44_v17 }
 0x126   :  { %1201 = vmatmul.msk.f32.gmra.mxu2 %vm56_vm0, %v342_v18 }
 0x127   :  { %1173 = vmatmul.msk.f32.gmra.mxu0 %vm56_vm0, %v45_v19 }
 0x12e   :  { %1202 = vmatmul.msk.f32.gmra.mxu2 %vm56_vm0, %v343_v20 }
 0x12f   :  { %1174 = vmatmul.msk.f32.gmra.mxu0 %vm56_vm0, %v46_v21 }
 0x136   :  { %1203 = vmatmul.msk.f32.gmra.mxu2 %vm56_vm0, %v344_v22 }
 0x137   :  { %1175 = vmatmul.msk.f32.gmra.mxu0 %vm56_vm0, %v47_v23 }
 0x17c   :  { %v98_v24 = vpop.f32.mrf.mxu0 }
 0x17d   :  { %v123_v25 = vsel %vm122_vm1, %v98_v24, -inf }
 0x17e   :  { %124 = vmax.xlane.f32.xlu2 %v123_v25 }
 0x181   :  { %v394_v26 = vpop.f32.mrf.mxu2 }
 0x182   :  { %v418_v28 = vsel %vm122_vm1, %v394_v26, -inf }
 0x184   :  { %v101_v27 = vpop.f32.mrf.mxu0 }
 0x185   :  { %v126_v32 = vsel %vm122_vm1, %v101_v27, -inf }
 0x186   :  { %419 = vmax.xlane.f32.xlu2 %v418_v28 }
 0x189   :  { %v397_v29 = vpop.f32.mrf.mxu2 }
 0x18a   :  { %v421_v30 = vsel %vm122_vm1, %v397_v29, -inf }
 0x18b   :  { %422 = vmax.xlane.f32.xlu0 %v421_v30 }
 0x18c   :  { %v1401_v31 = vpop.f32.mrf.mxu0 }
 0x18d   :  { %v129_v34 = vsel %vm122_vm1, %v1401_v31, -inf }
 0x18e   :  { %127 = vmax.xlane.f32.xlu2 %v126_v32 }
 0x191   :  { %v1410_v36 = vpop.f32.mrf.mxu2 }
 0x192   :  { %v424_v37 = vsel %vm122_vm1, %v1410_v36, -inf }
 0x194   :  { %v1404_v33 = vpop.f32.mrf.mxu0 }
 0x195   :  { %v132_v35 = vsel %vm122_vm1, %v1404_v33, -inf }
 0x196   :  { %130 = vmax.xlane.f32.xlu2 %v129_v34  ;;  %133 = vmax.xlane.f32.xlu1 %v132_v35 }
 0x199   :  { %v1414_v38 = vpop.f32.mrf.mxu2 }
 0x19a   :  { %v427_v39 = vsel %vm122_vm1, %v1414_v38, -inf }
 0x19c   :  { %v1418_v40 = vpop.f32.mrf.mxu0 }
 0x19d   :  { %v135_v41 = vsel %vm122_vm1, %v1418_v40, -inf }
 0x19e   :  { %425 = vmax.xlane.f32.xlu2 %v424_v37 }
 0x1a1   :  { %v1422_v42 = vpop.f32.mrf.mxu2 }
 0x1a2   :  { %v430_v43 = vsel %vm122_vm1, %v1422_v42, -inf }
 0x1a4   :  { %v1426_v44 = vpop.f32.mrf.mxu0 }
 0x1a5   :  { %v138_v45 = vsel %vm122_vm1, %v1426_v44, -inf }
 0x1a6   :  { %428 = vmax.xlane.f32.xlu2 %v427_v39 }
 0x1a9   :  { %v1430_v46 = vpop.f32.mrf.mxu2 }
 0x1aa   :  { %v433_v47 = vsel %vm122_vm1, %v1430_v46, -inf }
 0x1ac   :  { %v1434_v48 = vpop.f32.mrf.mxu0 }
 0x1ad   :  { %v141_v49 = vsel %vm122_vm1, %v1434_v48, -inf }
 0x1ae   :  { %136 = vmax.xlane.f32.xlu2 %v135_v41 }
 0x1b1   :  { %v1438_v50 = vpop.f32.mrf.mxu2 }
 0x1b2   :  { %v436_v51 = vsel %vm122_vm1, %v1438_v50, -inf }
 0x1b4   :  { %v1442_v52 = vpop.f32.mrf.mxu0 }
 0x1b5   :  { %v144_v53 = vsel %vm122_vm1, %v1442_v52, -inf }
 0x1b6   :  { %431 = vmax.xlane.f32.xlu2 %v430_v43 }
 0x1b9   :  { %v1446_v54 = vpop.f32.mrf.mxu2 }
 0x1ba   :  { %v439_v55 = vsel %vm122_vm1, %v1446_v54, -inf }
 0x1be   :  { %139 = vmax.xlane.f32.xlu2 %v138_v45 }
 0x1c6   :  { %434 = vmax.xlane.f32.xlu2 %v433_v47 }
 0x1ce   :  { %142 = vmax.xlane.f32.xlu2 %v141_v49 }
 0x1d6   :  { %437 = vmax.xlane.f32.xlu2 %v436_v51 }
 0x1de   :  { %145 = vmax.xlane.f32.xlu2 %v144_v53 }
 0x1e6   :  { %440 = vmax.xlane.f32.xlu2 %v439_v55 }
 0x1f1   :  { %v125_v56 = vpop.xlane.xlu2 %124 }
 0x1f2   :  { %v147_v57 = vsub.f32 %v98_v24, %v125_v56 }
 0x1f4   :  { %v155_v58 = vmul.f32 1.442695, %v147_v57 }
 0x1f6   :  { %1217 = vpow2.f32 %v155_v58 }
 0x1f9   :  { %v420_v59 = vpop.xlane.xlu2 %419 }
 0x1fa   :  { %v442_v60 = vsub.f32 %v394_v26, %v420_v59 }
 0x1fc   :  { %v1450_v61 = vpop.eup %1217  ;;  %v450_v62 = vmul.f32 1.442695, %v442_v60 }
 0x1fd   :  { %v171_v63 = vsel %vm122_vm1, %v1450_v61, 0.0 }
 0x1fe   :  { %1219 = vpow2.f32 %v450_v62  ;;  %172 = vadd.xlane.f32.xlu2 %v171_v63  ;;  %v423_v0 = vpop.xlane.xlu0 %422 }
 0x1ff   :  { %v443_v4 = vsub.f32 %v397_v29, %v423_v0 }
 0x201   :  { %v128_v1 = vpop.xlane.xlu2 %127  ;;  %v452_v7 = vmul.f32 1.442695, %v443_v4 }
 0x202   :  { %v148_v2 = vsub.f32 %v101_v27, %v128_v1 }
 0x204   :  { %v1454_v3 = vpop.eup %1219  ;;  %v157_v5 = vmul.f32 1.442695, %v148_v2 }
 0x205   :  { %v466_v6 = vsel %vm122_vm1, %v1454_v3, 0.0 }
 0x206   :  { %1221 = vpow2.f32 %v157_v5  ;;  %467 = vadd.xlane.f32.xlu2 %v466_v6 }
 0x207   :  { %1223 = vpow2.f32 %v452_v7 }
 0x209   :  { %v131_v8 = vpop.xlane.xlu2 %130  ;;  %v134_v13 = vpop.xlane.xlu1 %133 }
 0x20a   :  { %v149_v10 = vsub.f32 %v1401_v31, %v131_v8  ;;  %v150_v17 = vsub.f32 %v1404_v33, %v134_v13 }
 0x20c   :  { %v1458_v9 = vpop.eup %1221  ;;  %v159_v12 = vmul.f32 1.442695, %v149_v10  ;;  %v161_v20 = vmul.f32 1.442695, %v150_v17 }
 0x20d   :  { %v174_v11 = vsel %vm122_vm1, %v1458_v9, 0.0  ;;  %v1463_v15 = vpop.eup %1223 }
 0x20e   :  { %175 = vadd.xlane.f32.xlu2 %v174_v11  ;;  %1225 = vpow2.f32 %v159_v12  ;;  %v469_v19 = vsel %vm122_vm1, %v1463_v15, 0.0 }
 0x211   :  { %v426_v14 = vpop.xlane.xlu2 %425 }
 0x212   :  { %v444_v16 = vsub.f32 %v1410_v36, %v426_v14 }
 0x214   :  { %v454_v18 = vmul.f32 1.442695, %v444_v16  ;;  %v1469_v22 = vpop.eup %1225 }
 0x215   :  { %v177_v27 = vsel %vm122_vm1, %v1469_v22, 0.0 }
 0x216   :  { %1227 = vpow2.f32 %v454_v18  ;;  %470 = vadd.xlane.f32.xlu2 %v469_v19 }
 0x217   :  { %1229 = vpow2.f32 %v161_v20 }
 0x219   :  { %v429_v21 = vpop.xlane.xlu2 %428 }
 0x21a   :  { %v445_v23 = vsub.f32 %v1414_v38, %v429_v21 }
 0x21c   :  { %v1472_v24 = vpop.eup %1227  ;;  %v456_v25 = vmul.f32 1.442695, %v445_v23 }
 0x21d   :  { %v472_v26 = vsel %vm122_vm1, %v1472_v24, 0.0  ;;  %v1478_v29 = vpop.eup %1229 }
 0x21e   :  { %1231 = vpow2.f32 %v456_v25  ;;  %473 = vadd.xlane.f32.xlu1 %v472_v26  ;;  %178 = vadd.xlane.f32.xlu2 %v177_v27  ;;  %v180_v34 = vsel %vm122_vm1, %v1478_v29, 0.0 }
 0x221   :  { %v137_v28 = vpop.xlane.xlu2 %136 }
 0x222   :  { %v151_v30 = vsub.f32 %v1418_v40, %v137_v28 }
 0x224   :  { %v1481_v31 = vpop.eup %1231  ;;  %v163_v32 = vmul.f32 1.442695, %v151_v30 }
 0x225   :  { %v475_v33 = vsel %vm122_vm1, %v1481_v31, 0.0 }
 0x226   :  { %1233 = vpow2.f32 %v163_v32  ;;  %476 = vadd.xlane.f32.xlu1 %v475_v33  ;;  %181 = vadd.xlane.f32.xlu2 %v180_v34 }
 0x229   :  { %v432_v35 = vpop.xlane.xlu2 %431 }
 0x22a   :  { %v446_v36 = vsub.f32 %v1422_v42, %v432_v35 }
 0x22c   :  { %v1488_v37 = vpop.eup %1233  ;;  %v458_v38 = vmul.f32 1.442695, %v446_v36 }
 0x22d   :  { %v183_v39 = vsel %vm122_vm1, %v1488_v37, 0.0 }
 0x22e   :  { %1235 = vpow2.f32 %v458_v38  ;;  %184 = vadd.xlane.f32.xlu2 %v183_v39 }
 0x231   :  { %v140_v40 = vpop.xlane.xlu2 %139 }
 0x232   :  { %v152_v41 = vsub.f32 %v1426_v44, %v140_v40 }
 0x234   :  { %v1493_v43 = vpop.eup %1235  ;;  %v165_v45 = vmul.f32 1.442695, %v152_v41 }
 0x235   :  { %v478_v47 = vsel %vm122_vm1, %v1493_v43, 0.0 }
 0x236   :  { %1237 = vpow2.f32 %v165_v45  ;;  %479 = vadd.xlane.f32.xlu1 %v478_v47 }
 0x239   :  { %v435_v42 = vpop.xlane.xlu2 %434 }
 0x23a   :  { %v447_v49 = vsub.f32 %v1430_v46, %v435_v42 }
 0x23c   :  { %v1498_v51 = vpop.eup %1237  ;;  %v460_v53 = vmul.f32 1.442695, %v447_v49 }
 0x23d   :  { %v186_v55 = vsel %vm122_vm1, %v1498_v51, 0.0 }
 0x23e   :  { %1239 = vpow2.f32 %v460_v53  ;;  %187 = vadd.xlane.f32.xlu2 %v186_v55 }
 0x241   :  { %v143_v44 = vpop.xlane.xlu2 %142 }
 0x242   :  { %v153_v56 = vsub.f32 %v1434_v48, %v143_v44 }
 0x244   :  { %v1503_v57 = vpop.eup %1239  ;;  %v167_v58 = vmul.f32 1.442695, %v153_v56 }
 0x245   :  { %v481_v59 = vsel %vm122_vm1, %v1503_v57, 0.0 }
 0x246   :  { %1241 = vpow2.f32 %v167_v58  ;;  %482 = vadd.xlane.f32.xlu0 %v481_v59 }
 0x249   :  { %v438_v46 = vpop.xlane.xlu2 %437 }
 0x24a   :  { %v448_v60 = vsub.f32 %v1438_v50, %v438_v46 }
 0x24c   :  { %v1508_v62 = vpop.eup %1241  ;;  %v462_v63 = vmul.f32 1.442695, %v448_v60 }
 0x24d   :  { %v189_v0 = vsel %vm122_vm1, %v1508_v62, 0.0 }
 0x24e   :  { %1243 = vpow2.f32 %v462_v63  ;;  %190 = vadd.xlane.f32.xlu2 %v189_v0 }
 0x251   :  { %v146_v48 = vpop.xlane.xlu2 %145 }
 0x252   :  { %v154_v1 = vsub.f32 %v1442_v52, %v146_v48 }
 0x254   :  { %v1513_v2 = vpop.eup %1243  ;;  %v169_v4 = vmul.f32 1.442695, %v154_v1 }
 0x255   :  { %v484_v5 = vsel %vm122_vm1, %v1513_v2, 0.0 }
 0x256   :  { %1245 = vpow2.f32 %v169_v4  ;;  %485 = vadd.xlane.f32.xlu2 %v484_v5 }
 0x259   :  { %v441_v50 = vpop.xlane.xlu2 %440 }
 0x25a   :  { %v449_v6 = vsub.f32 %v1446_v54, %v441_v50 }
 0x25c   :  { %v1518_v7 = vpop.eup %1245  ;;  %v464_v8 = vmul.f32 1.442695, %v449_v6 }
 0x25d   :  { %v192_v10 = vsel %vm122_vm1, %v1518_v7, 0.0 }
 0x25e   :  { %1247 = vpow2.f32 %v464_v8  ;;  %193 = vadd.xlane.f32.xlu1 %v192_v10 }
 0x264   :  { %v1522_v52 = vpop.eup %1247 }
 0x265   :  { %v487_v11 = vsel %vm122_vm1, %v1522_v52, 0.0 }
 0x266   :  { %488 = vadd.xlane.f32.xlu0 %v487_v11 }
 0x271   :  { %v173_v12 = vpop.xlane.xlu2 %172 }
 0x272   :  { %1249 = vrcp.f32 %v173_v12 }
 0x278   :  { %v1250_v13 = vpop.eup %1249 }
 0x279   :  { %v203_v14 = vmul.f32 %v1250_v13, %v173_v12  ;;  %v468_v16 = vpop.xlane.xlu2 %467 }
 0x27a   :  { %1251 = vrcp.f32 %v468_v16 }
 0x27b   :  { %v211_v54 = vsub.f32 2.0, %v203_v14 }
 0x27d   :  { %v219_v17 = vmul.f32 %v1250_v13, %v211_v54 }
 0x27f   :  { %v227_v18 = vmul.f32 %v1450_v61, %v219_v17 }
 0x280   :  { %v1252_v19 = vpop.eup %1251 }
 0x281   :  { %v498_v20 = vmul.f32 %v1252_v19, %v468_v16  ;;  %v176_v21 = vpop.xlane.xlu2 %175  ;;  %235 = vst.msk [vmem:[#allocation3] sm:$0xff] %vm122_vm1, %v227_v18  ;;  %1176 = vmatmul.msk.f32.vlgmr.msra.gmra.mxu1 %vm122_vm1, %v227_v18 }
 0x282   :  { %1253 = vrcp.f32 %v176_v21 }
 0x283   :  { %v506_v23 = vsub.f32 2.0, %v498_v20 }
 0x285   :  { %v514_v25 = vmul.f32 %v1252_v19, %v506_v23 }
 0x287   :  { %v522_v26 = vmul.f32 %v1454_v3, %v514_v25 }
 0x288   :  { %v1254_v27 = vpop.eup %1253 }
 0x289   :  { %v204_v28 = vmul.f32 %v1254_v27, %v176_v21  ;;  %531 = vst.msk [vmem:[#allocation3 + $0x40] sm:$0xff] %vm122_vm1, %v522_v26  ;;  %1204 = vmatmul.msk.f32.vlgmr.msra.gmra.mxu3 %vm122_vm1, %v522_v26  ;;  %v471_v30 = vpop.xlane.xlu2 %470 }
 0x28a   :  { %1255 = vrcp.f32 %v471_v30 }
 0x28b   :  { %v212_v61 = vsub.f32 2.0, %v204_v28 }
 0x28d   :  { %v220_v32 = vmul.f32 %v1254_v27, %v212_v61 }
 0x28f   :  { %v228_v33 = vmul.f32 %v1458_v9, %v220_v32 }
 0x290   :  { %v1256_v34 = vpop.eup %1255 }
 0x291   :  { %v499_v35 = vmul.f32 %v1256_v34, %v471_v30  ;;  %v474_v36 = vpop.xlane.xlu1 %473  ;;  %236 = vst.msk [vmem:[#allocation3 + $0x8] sm:$0xff] %vm122_vm1, %v228_v33  ;;  %1177 = vmatmul.msk.f32.gmra.mxu1 %vm122_vm1, %v228_v33  ;;  %v179_v3 = vpop.xlane.xlu2 %178 }
 0x292   :  { %1257 = vrcp.f32 %v474_v36 }
 0x293   :  { %v507_v38 = vsub.f32 2.0, %v499_v35  ;;  %1259 = vrcp.f32 %v179_v3 }
 0x295   :  { %v515_v39 = vmul.f32 %v1256_v34, %v507_v38 }
 0x297   :  { %v523_v40 = vmul.f32 %v1463_v15, %v515_v39 }
 0x298   :  { %v1258_v41 = vpop.eup %1257 }
 0x299   :  { %v1260_v45 = vpop.eup %1259  ;;  %v500_v47 = vmul.f32 %v1258_v41, %v474_v36  ;;  %v477_v42 = vpop.xlane.xlu1 %476  ;;  %532 = vst.msk [vmem:[#allocation3 + $0x48] sm:$0xff] %vm122_vm1, %v523_v40  ;;  %1205 = vmatmul.msk.f32.gmra.mxu3 %vm122_vm1, %v523_v40 }
 0x29a   :  { %v182_v9 = vpop.xlane.xlu2 %181  ;;  %v205_v49 = vmul.f32 %v1260_v45, %v179_v3  ;;  %1261 = vrcp.f32 %v477_v42 }
 0x29b   :  { %v508_v53 = vsub.f32 2.0, %v500_v47  ;;  %1263 = vrcp.f32 %v182_v9 }
 0x29c   :  { %v213_v55 = vsub.f32 2.0, %v205_v49 }
 0x29d   :  { %v516_v44 = vmul.f32 %v1258_v41, %v508_v53 }
 0x29e   :  { %v221_v56 = vmul.f32 %v1260_v45, %v213_v55 }
 0x29f   :  { %v524_v58 = vmul.f32 %v1472_v24, %v516_v44 }
 0x2a0   :  { %v1262_v59 = vpop.eup %1261  ;;  %v229_v15 = vmul.f32 %v1469_v22, %v221_v56 }
 0x2a1   :  { %v1264_v46 = vpop.eup %1263  ;;  %v501_v60 = vmul.f32 %v1262_v59, %v477_v42  ;;  %533 = vst.msk [vmem:[#allocation3 + $0x50] sm:$0xff] %vm122_vm1, %v524_v58  ;;  %1206 = vmatmul.msk.f32.gmra.mxu3 %vm122_vm1, %v524_v58 }
 0x2a2   :  { %v185_v63 = vpop.xlane.xlu2 %184  ;;  %v206_v0 = vmul.f32 %v1264_v46, %v182_v9  ;;  %237 = vst.msk [vmem:[#allocation3 + $0x10] sm:$0xff] %vm122_vm1, %v229_v15  ;;  %1178 = vmatmul.msk.f32.gmra.mxu1 %vm122_vm1, %v229_v15 }
 0x2a3   :  { %1265 = vrcp.f32 %v185_v63  ;;  %v509_v48 = vsub.f32 2.0, %v501_v60 }
 0x2a4   :  { %v214_v1 = vsub.f32 2.0, %v206_v0 }
 0x2a5   :  { %v517_v4 = vmul.f32 %v1262_v59, %v509_v48 }
 0x2a6   :  { %v222_v24 = vmul.f32 %v1264_v46, %v214_v1 }
 0x2a7   :  { %v525_v5 = vmul.f32 %v1481_v31, %v517_v4 }
 0x2a8   :  { %v230_v50 = vmul.f32 %v1478_v29, %v222_v24 }
 0x2a9   :  { %v1266_v22 = vpop.eup %1265  ;;  %v480_v8 = vpop.xlane.xlu1 %479  ;;  %534 = vst.msk [vmem:[#allocation3 + $0x58] sm:$0xff] %vm122_vm1, %v525_v5  ;;  %1207 = vmatmul.msk.f32.gmra.mxu3 %vm122_vm1, %v525_v5 }
 0x2aa   :  { %v207_v6 = vmul.f32 %v1266_v22, %v185_v63  ;;  %1267 = vrcp.f32 %v480_v8  ;;  %238 = vst.msk [vmem:[#allocation3 + $0x18] sm:$0xff] %vm122_vm1, %v230_v50  ;;  %1179 = vmatmul.msk.f32.gmra.mxu1 %vm122_vm1, %v230_v50 }
 0x2ac   :  { %v215_v10 = vsub.f32 2.0, %v207_v6 }
 0x2ae   :  { %v223_v11 = vmul.f32 %v1266_v22, %v215_v10 }
 0x2b0   :  { %v231_v12 = vmul.f32 %v1488_v37, %v223_v11  ;;  %v1268_v13 = vpop.eup %1267 }
 0x2b1   :  { %v502_v31 = vmul.f32 %v1268_v13, %v480_v8  ;;  %v188_v29 = vpop.xlane.xlu2 %187 }
 0x2b2   :  { %239 = vst.msk [vmem:[#allocation3 + $0x20] sm:$0xff] %vm122_vm1, %v231_v12  ;;  %1180 = vmatmul.msk.f32.gmra.mxu1 %vm122_vm1, %v231_v12  ;;  %1269 = vrcp.f32 %v188_v29 }
 0x2b3   :  { %v510_v14 = vsub.f32 2.0, %v502_v31 }
 0x2b5   :  { %v518_v16 = vmul.f32 %v1268_v13, %v510_v14 }
 0x2b7   :  { %v526_v54 = vmul.f32 %v1493_v43, %v518_v16 }
 0x2b8   :  { %v1270_v17 = vpop.eup %1269 }
 0x2b9   :  { %v208_v18 = vmul.f32 %v1270_v17, %v188_v29  ;;  %535 = vst.msk [vmem:[#allocation3 + $0x60] sm:$0xff] %vm122_vm1, %v526_v54  ;;  %1208 = vmatmul.msk.f32.gmra.mxu3 %vm122_vm1, %v526_v54  ;;  %v483_v19 = vpop.xlane.xlu0 %482 }
 0x2ba   :  { %1271 = vrcp.f32 %v483_v19 }
 0x2bb   :  { %v216_v37 = vsub.f32 2.0, %v208_v18 }
 0x2bd   :  { %v224_v20 = vmul.f32 %v1270_v17, %v216_v37 }
 0x2bf   :  { %v232_v21 = vmul.f32 %v1498_v51, %v224_v20 }
 0x2c0   :  { %v1272_v23 = vpop.eup %1271 }
 0x2c1   :  { %v503_v25 = vmul.f32 %v1272_v23, %v483_v19  ;;  %240 = vst.msk [vmem:[#allocation3 + $0x28] sm:$0xff] %vm122_vm1, %v232_v21  ;;  %1181 = vmatmul.msk.f32.gmra.mxu1 %vm122_vm1, %v232_v21  ;;  %v191_v26 = vpop.xlane.xlu2 %190 }
 0x2c2   :  { %1273 = vrcp.f32 %v191_v26 }
 0x2c3   :  { %v511_v43 = vsub.f32 2.0, %v503_v25 }
 0x2c5   :  { %v519_v27 = vmul.f32 %v1272_v23, %v511_v43 }
 0x2c7   :  { %v527_v28 = vmul.f32 %v1503_v57, %v519_v27 }
 0x2c8   :  { %v1274_v30 = vpop.eup %1273 }
 0x2c9   :  { %v209_v61 = vmul.f32 %v1274_v30, %v191_v26  ;;  %v486_v32 = vpop.xlane.xlu2 %485  ;;  %536 = vst.msk [vmem:[#allocation3 + $0x68] sm:$0xff] %vm122_vm1, %v527_v28  ;;  %1209 = vmatmul.msk.f32.gmra.mxu3 %vm122_vm1, %v527_v28 }
 0x2ca   :  { %1275 = vrcp.f32 %v486_v32 }
 0x2cb   :  { %v217_v51 = vsub.f32 2.0, %v209_v61 }
 0x2cd   :  { %v225_v33 = vmul.f32 %v1274_v30, %v217_v51 }
 0x2cf   :  { %v233_v34 = vmul.f32 %v1508_v62, %v225_v33 }
 0x2d0   :  { %v1276_v35 = vpop.eup %1275 }
 0x2d1   :  { %v504_v36 = vmul.f32 %v1276_v35, %v486_v32  ;;  %v194_v3 = vpop.xlane.xlu1 %193  ;;  %241 = vst.msk [vmem:[#allocation3 + $0x30] sm:$0xff] %vm122_vm1, %v233_v34  ;;  %1182 = vmatmul.msk.f32.gmra.mxu1 %vm122_vm1, %v233_v34 }
 0x2d2   :  { %1277 = vrcp.f32 %v194_v3 }
 0x2d3   :  { %v512_v57 = vsub.f32 2.0, %v504_v36 }
 0x2d5   :  { %v520_v38 = vmul.f32 %v1276_v35, %v512_v57 }
 0x2d7   :  { %v528_v39 = vmul.f32 %v1513_v2, %v520_v38 }
 0x2d8   :  { %v1278_v40 = vpop.eup %1277 }
 0x2d9   :  { %v210_v41 = vmul.f32 %v1278_v40, %v194_v3  ;;  %537 = vst.msk [vmem:[#allocation3 + $0x70] sm:$0xff] %vm122_vm1, %v528_v39  ;;  %1210 = vmatmul.msk.f32.gmra.mxu3 %vm122_vm1, %v528_v39  ;;  %v489_v45 = vpop.xlane.xlu0 %488  ;;  %v1657_v39 = vld [vmem:[%s2100_s3 + $0x8] sm:$0xff] }
 0x2da   :  { %1279 = vrcp.f32 %v489_v45 }
 0x2db   :  { %v218_v62 = vsub.f32 2.0, %v210_v41  ;;  %v1667_v41 = vld [vmem:[%s2100_s3 + $0x10] sm:$0xff] }
 0x2dd   :  { %v226_v47 = vmul.f32 %v1278_v40, %v218_v62  ;;  %v1662_v40 = vld [vmem:[%s2100_s3] sm:$0xff]  ;;  %v1673_v62 = vld [vmem:[%s2100_s3 + $0x18] sm:$0xff] }
 0x2df   :  { %v234_v42 = vmul.f32 %v1518_v7, %v226_v47 }
 0x2e0   :  { %v1280_v9 = vpop.eup %1279 }
 0x2e1   :  { %v505_v49 = vmul.f32 %v1280_v9, %v489_v45  ;;  %242 = vst.msk [vmem:[#allocation3 + $0x38] sm:$0xff] %vm122_vm1, %v234_v42  ;;  %1183 = vmatmul.msk.f32.gmra.mxu1 %vm122_vm1, %v234_v42 }
 0x2e3   :  { %v513_v53 = vsub.f32 2.0, %v505_v49  ;;  %v1680_v49 = vld [vmem:[%s2100_s3 + $0x20] sm:$0xff] }
 0x2e5   :  { %v521_v2 = vmul.f32 %v1280_v9, %v513_v53 }
 0x2e7   :  { %v529_v55 = vmul.f32 %v1522_v52, %v521_v2 }
 0x2e9   :  { %538 = vst.msk [vmem:[#allocation3 + $0x78] sm:$0xff] %vm122_vm1, %v529_v55  ;;  %1211 = vmatmul.msk.f32.gmra.mxu3 %vm122_vm1, %v529_v55 }
 0x2ea   :  { %1152 = dma.vmem_to_hbm [thread:$0]  %s1145_s19, 2048, %s1147_s17, [#allocation4], %s1310_s20, %s1310_s20, %s1311_s21  }
 0x2fe   :  { %v284_v44 = vpop.f32.mrf.mxu1 }
 0x2ff   :  { %308 = vst.msk [vmem:[#allocation2] sm:$0xff] %vm56_vm0, %v284_v44 }
 0x306   :  { %v1575_v56 = vld [vmem:[#allocation2] sm:$0xff] }
 0x307   :  { %v644_v7 = vsel %vm56_vm0, %v1575_v56, 0.0 }
 0x308   :  { %645 = vadd.xlane.f32.xlu1 %v644_v7  ;;  %v1687_v7 = vld [vmem:[%s2100_s3 + $0x28] sm:$0xff] }
 0x30c   :  { %v580_v58 = vpop.f32.mrf.mxu3 }
 0x30d   :  { %604 = vst.msk [vmem:[#allocation2 + $0x40] sm:$0xff] %vm56_vm0, %v580_v58 }
 0x30e   :  { %v287_v59 = vpop.f32.mrf.mxu1 }
 0x30f   :  { %309 = vst.msk [vmem:[#allocation2 + $0x8] sm:$0xff] %vm56_vm0, %v287_v59 }
 0x314   :  { %v1609_v31 = vld [vmem:[#allocation2 + $0x40] sm:$0xff] }
 0x315   :  { %v668_v14 = vsel %vm56_vm0, %v1609_v31, 0.0 }
 0x316   :  { %v1581_v52 = vld [vmem:[#allocation2 + $0x8] sm:$0xff] }
 0x317   :  { %v647_v15 = vsel %vm56_vm0, %v1581_v52, 0.0 }
 0x318   :  { %648 = vadd.xlane.f32.xlu2 %v647_v15 }
 0x31c   :  { %v583_v46 = vpop.f32.mrf.mxu3 }
 0x31d   :  { %605 = vst.msk [vmem:[#allocation2 + $0x48] sm:$0xff] %vm56_vm0, %v583_v46 }
 0x31f   :  { %v290_v60 = vpop.f32.mrf.mxu1 }
 0x320   :  { %310 = vst.msk [vmem:[#allocation2 + $0x10] sm:$0xff] %vm56_vm0, %v290_v60  ;;  %v1695_v60 = vld [vmem:[%s2100_s3 + $0x30] sm:$0xff] }
 0x324   :  { %v586_v63 = vpop.f32.mrf.mxu3  ;;  %v1623_v37 = vld [vmem:[#allocation2 + $0x48] sm:$0xff] }
 0x325   :  { %606 = vst.msk [vmem:[#allocation2 + $0x50] sm:$0xff] %vm56_vm0, %v586_v63  ;;  %v671_v21 = vsel %vm56_vm0, %v1623_v37, 0.0 }
 0x327   :  { %v293_v0 = vpop.f32.mrf.mxu1  ;;  %v1588_v48 = vld [vmem:[#allocation2 + $0x10] sm:$0xff] }
 0x328   :  { %311 = vst.msk [vmem:[#allocation2 + $0x18] sm:$0xff] %vm56_vm0, %v293_v0  ;;  %v650_v1 = vsel %vm56_vm0, %v1588_v48, 0.0 }
 0x329   :  { %651 = vadd.xlane.f32.xlu0 %v650_v1 }
 0x32c   :  { %v589_v4 = vpop.f32.mrf.mxu3  ;;  %v1641_v61 = vld [vmem:[#allocation2 + $0x50] sm:$0xff] }
 0x32d   :  { %607 = vst.msk [vmem:[#allocation2 + $0x58] sm:$0xff] %vm56_vm0, %v589_v4  ;;  %v674_v32 = vsel %vm56_vm0, %v1641_v61, 0.0 }
 0x32f   :  { %v296_v24 = vpop.f32.mrf.mxu1  ;;  %v1594_v5 = vld [vmem:[#allocation2 + $0x18] sm:$0xff] }
 0x330   :  { %312 = vst.msk [vmem:[#allocation2 + $0x20] sm:$0xff] %vm56_vm0, %v296_v24  ;;  %v653_v22 = vsel %vm56_vm0, %v1594_v5, 0.0 }
 0x331   :  { %654 = vadd.xlane.f32.xlu1 %v653_v22 }
 0x334   :  { %v1615_v16 = vld [vmem:[#allocation2 + $0x58] sm:$0xff] }
 0x335   :  { %v677_v17 = vsel %vm56_vm0, %v1615_v16, 0.0 }
 0x337   :  { %v1599_v50 = vld [vmem:[#allocation2 + $0x20] sm:$0xff] }
 0x338   :  { %v656_v6 = vsel %vm56_vm0, %v1599_v50, 0.0 }
 0x339   :  { %657 = vadd.xlane.f32.xlu2 %v656_v6 }
 0x33c   :  { %v592_v8 = vpop.f32.mrf.mxu3 }
 0x33d   :  { %608 = vst.msk [vmem:[#allocation2 + $0x60] sm:$0xff] %vm56_vm0, %v592_v8 }
 0x33e   :  { %v299_v10 = vpop.f32.mrf.mxu1 }
 0x33f   :  { %313 = vst.msk [vmem:[#allocation2 + $0x28] sm:$0xff] %vm56_vm0, %v299_v10 }
 0x344   :  { %v1631_v25 = vld [vmem:[#allocation2 + $0x60] sm:$0xff] }
 0x345   :  { %v680_v27 = vsel %vm56_vm0, %v1631_v25, 0.0 }
 0x346   :  { %v1605_v11 = vld [vmem:[#allocation2 + $0x28] sm:$0xff] }
 0x347   :  { %v659_v12 = vsel %vm56_vm0, %v1605_v11, 0.0 }
 0x348   :  { %660 = vadd.xlane.f32.xlu0 %v659_v12  ;;  %v1705_v12 = vld [vmem:[%s2100_s3 + $0x40] sm:$0xff] }
 0x34c   :  { %v595_v13 = vpop.f32.mrf.mxu3 }
 0x34d   :  { %609 = vst.msk [vmem:[#allocation2 + $0x68] sm:$0xff] %vm56_vm0, %v595_v13 }
 0x34e   :  { %v302_v29 = vpop.f32.mrf.mxu1 }
 0x34f   :  { %314 = vst.msk [vmem:[#allocation2 + $0x30] sm:$0xff] %vm56_vm0, %v302_v29  ;;  %v1710_v29 = vld [vmem:[%s2100_s3 + $0x38] sm:$0xff] }
 0x350   :  { %669 = vadd.xlane.f32.xlu0 %v668_v14 }
 0x354   :  { %v1648_v33 = vld [vmem:[#allocation2 + $0x68] sm:$0xff] }
 0x355   :  { %v683_v35 = vsel %vm56_vm0, %v1648_v33, 0.0 }
 0x356   :  { %v1617_v54 = vld [vmem:[#allocation2 + $0x30] sm:$0xff] }
 0x357   :  { %v662_v18 = vsel %vm56_vm0, %v1617_v54, 0.0 }
 0x358   :  { %678 = vadd.xlane.f32.xlu0 %v677_v17  ;;  %663 = vadd.xlane.f32.xlu1 %v662_v18 }
 0x35c   :  { %v598_v19 = vpop.f32.mrf.mxu3 }
 0x35d   :  { %610 = vst.msk [vmem:[#allocation2 + $0x70] sm:$0xff] %vm56_vm0, %v598_v19 }
 0x35e   :  { %v305_v20 = vpop.f32.mrf.mxu1 }
 0x35f   :  { %315 = vst.msk [vmem:[#allocation2 + $0x38] sm:$0xff] %vm56_vm0, %v305_v20 }
 0x360   :  { %672 = vadd.xlane.f32.xlu1 %v671_v21 }
 0x364   :  { %v1629_v23 = vld [vmem:[#allocation2 + $0x70] sm:$0xff] }
 0x365   :  { %v686_v26 = vsel %vm56_vm0, %v1629_v23, 0.0 }
 0x366   :  { %687 = vadd.xlane.f32.xlu0 %v686_v26  ;;  %v1635_v43 = vld [vmem:[#allocation2 + $0x38] sm:$0xff]  ;;  %v1718_v26 = vld [vmem:[%s2100_s3 + $0x48] sm:$0xff] }
 0x367   :  { %v665_v28 = vsel %vm56_vm0, %v1635_v43, 0.0 }
 0x368   :  { %681 = vadd.xlane.f32.xlu1 %v680_v27  ;;  %666 = vadd.xlane.f32.xlu2 %v665_v28 }
 0x36c   :  { %v601_v30 = vpop.f32.mrf.mxu3 }
 0x36d   :  { %611 = vst.msk [vmem:[#allocation2 + $0x78] sm:$0xff] %vm56_vm0, %v601_v30 }
 0x370   :  { %675 = vadd.xlane.f32.xlu2 %v674_v32 }
 0x374   :  { %v1646_v51 = vld [vmem:[#allocation2 + $0x78] sm:$0xff] }
 0x375   :  { %v689_v34 = vsel %vm56_vm0, %v1646_v51, 0.0 }
 0x376   :  { %690 = vadd.xlane.f32.xlu1 %v689_v34  ;;  %v1726_v34 = vld [vmem:[%s2100_s3 + $0x58] sm:$0xff] }
 0x378   :  { %684 = vadd.xlane.f32.xlu2 %v683_v35 }
 0x37b   :  { %v646_v36 = vpop.xlane.xlu1 %645 }
 0x37c   :  { %v692_v42 = vmul.f32 %v646_v36, %v1662_v40 }
 0x37e   :  { %v708_v58 = vsel %vm56_vm0, %v692_v42, 0.0 }
 0x38b   :  { %v649_v57 = vpop.xlane.xlu2 %648 }
 0x38c   :  { %v693_v45 = vmul.f32 %v649_v57, %v1657_v39 }
 0x38e   :  { %v709_v55 = vsel %vm56_vm0, %v693_v45, 0.0 }
 0x38f   :  { %v710_v46 = vadd.f32 %v709_v55, %v708_v58 }
 0x39c   :  { %v652_v3 = vpop.xlane.xlu0 %651 }
 0x39d   :  { %v694_v9 = vmul.f32 %v652_v3, %v1667_v41  ;;  %v1731_v3 = vld [vmem:[%s2100_s3 + $0x50] sm:$0xff] }
 0x39f   :  { %v711_v59 = vsel %vm56_vm0, %v694_v9, 0.0  ;;  %v1739_v9 = vld [vmem:[%s2100_s3 + $0x60] sm:$0xff] }
 0x3a0   :  { %v712_v1 = vadd.f32 %v711_v59, %v710_v46  ;;  %v1747_v59 = vld [vmem:[%s2100_s3 + $0x70] sm:$0xff] }
 0x3a4   :  { %v655_v38 = vpop.xlane.xlu1 %654 }
 0x3a5   :  { %v695_v44 = vmul.f32 %v655_v38, %v1673_v62 }
 0x3a7   :  { %v713_v63 = vsel %vm56_vm0, %v695_v44, 0.0 }
 0x3a8   :  { %v714_v22 = vadd.f32 %v713_v63, %v712_v1  ;;  %v1752_v63 = vld [vmem:[%s2100_s3 + $0x68] sm:$0xff] }
 0x3ac   :  { %v658_v53 = vpop.xlane.xlu2 %657 }
 0x3ad   :  { %v696_v15 = vmul.f32 %v658_v53, %v1680_v49 }
 0x3af   :  { %v715_v4 = vsel %vm56_vm0, %v696_v15, 0.0 }
 0x3b0   :  { %v716_v10 = vadd.f32 %v715_v4, %v714_v22 }
 0x3bb   :  { %v661_v47 = vpop.xlane.xlu0 %660 }
 0x3bc   :  { %v697_v0 = vmul.f32 %v661_v47, %v1687_v7 }
 0x3be   :  { %v717_v8 = vsel %vm56_vm0, %v697_v0, 0.0  ;;  %v1757_v0 = vld [vmem:[%s2100_s3 + $0x78] sm:$0xff] }
 0x3bf   :  { %v718_v17 = vadd.f32 %v717_v8, %v716_v10 }
 0x3c3   :  { %v670_v6 = vpop.xlane.xlu0 %669 }
 0x3c4   :  { %v700_v19 = vmul.f32 %v670_v6, %v1705_v12 }
 0x3c6   :  { %v723_v30 = vsel %vm56_vm0, %v700_v19, 0.0 }
 0x3cb   :  { %v664_v2 = vpop.xlane.xlu1 %663  ;;  %v679_v35 = vpop.xlane.xlu0 %678 }
 0x3cc   :  { %v698_v24 = vmul.f32 %v664_v2, %v1695_v60  ;;  %v703_v45 = vmul.f32 %v679_v35, %v1726_v34 }
 0x3ce   :  { %v719_v14 = vsel %vm56_vm0, %v698_v24, 0.0  ;;  %v729_v44 = vsel %vm56_vm0, %v703_v45, 0.0 }
 0x3cf   :  { %v720_v21 = vadd.f32 %v719_v14, %v718_v17 }
 0x3d3   :  { %v673_v13 = vpop.xlane.xlu1 %672 }
 0x3d4   :  { %v701_v32 = vmul.f32 %v673_v13, %v1718_v26 }
 0x3d6   :  { %v725_v47 = vsel %vm56_vm0, %v701_v32, 0.0 }
 0x3d9   :  { %v688_v15 = vpop.xlane.xlu0 %687 }
 0x3da   :  { %v706_v24 = vmul.f32 %v688_v15, %v1747_v59 }
 0x3db   :  { %v667_v18 = vpop.xlane.xlu2 %666  ;;  %v682_v57 = vpop.xlane.xlu1 %681 }
 0x3dc   :  { %v699_v20 = vmul.f32 %v667_v18, %v1710_v29  ;;  %v704_v58 = vmul.f32 %v682_v57, %v1739_v9  ;;  %v735_v17 = vsel %vm56_vm0, %v706_v24, 0.0 }
 0x3de   :  { %v721_v27 = vsel %vm56_vm0, %v699_v20, 0.0  ;;  %v731_v22 = vsel %vm56_vm0, %v704_v58, 0.0 }
 0x3df   :  { %v722_v28 = vadd.f32 %v721_v27, %v720_v21 }
 0x3e1   :  { %v724_v36 = vadd.f32 %v723_v30, %v722_v28 }
 0x3e3   :  { %v676_v38 = vpop.xlane.xlu2 %675  ;;  %v726_v53 = vadd.f32 %v725_v47, %v724_v36 }
 0x3e4   :  { %v702_v42 = vmul.f32 %v676_v38, %v1731_v3 }
 0x3e6   :  { %v727_v2 = vsel %vm56_vm0, %v702_v42, 0.0 }
 0x3e7   :  { %v728_v55 = vadd.f32 %v727_v2, %v726_v53 }
 0x3e9   :  { %v730_v46 = vadd.f32 %v729_v44, %v728_v55  ;;  %v691_v1 = vpop.xlane.xlu1 %690 }
 0x3ea   :  { %v707_v10 = vmul.f32 %v691_v1, %v1757_v0 }
 0x3eb   :  { %v685_v4 = vpop.xlane.xlu2 %684  ;;  %v732_v8 = vadd.f32 %v731_v22, %v730_v46 }
 0x3ec   :  { %v705_v6 = vmul.f32 %v685_v4, %v1752_v63  ;;  %v737_v19 = vsel %vm56_vm0, %v707_v10, 0.0 }
 0x3ee   :  { %v733_v13 = vsel %vm56_vm0, %v705_v6, 0.0 }
 0x3ef   :  { %v734_v14 = vadd.f32 %v733_v13, %v732_v8 }
 0x3f1   :  { %v736_v18 = vadd.f32 %v735_v17, %v734_v14 }
 0x3f3   :  { %v738_v20 = vadd.f32 %v737_v19, %v736_v18 }
 0x3f5   :  { %v739_v21 = vrot.slane %v738_v20, 4 }
 0x3f7   :  { %v740_v27 = vadd.f32 %v739_v21, %v738_v20 }
 0x3f9   :  { %v741_v28 = vrot.slane %v740_v27, 2 }
 0x3fb   :  { %v742_v30 = vadd.f32 %v741_v28, %v740_v27 }
 0x3fd   :  { %v743_v32 = vrot.slane %v742_v30, 1 }
 0x3ff   :  { %v744_v35 = vadd.f32 %v743_v32, %v742_v30 }
 0x401   :  { %v745_v36 = vmul.f32 0.0078125, %v744_v35 }
 0x403   :  { %v748_v57 = vmul.f32 %v745_v36, %v1667_v41  ;;  %v747_v38 = vmul.f32 %v745_v36, %v1657_v39  ;;  %v746_v45 = vmul.f32 %v745_v36, %v1662_v40  ;;  %v751_v2 = vmul.f32 %v745_v36, %v1687_v7 }
 0x404   :  { %v750_v55 = vmul.f32 %v745_v36, %v1680_v49  ;;  %v749_v44 = vmul.f32 %v745_v36, %v1673_v62  ;;  %v754_v1 = vmul.f32 %v745_v36, %v1705_v12  ;;  %v753_v4 = vmul.f32 %v745_v36, %v1710_v29 }
 0x405   :  { %v768_v47 = vsel %vm56_vm0, %v748_v57, 0.0  ;;  %v765_v42 = vsel %vm56_vm0, %v747_v38, 0.0  ;;  %v762_v53 = vsel %vm56_vm0, %v746_v45, 0.0  ;;  %v777_v58 = vsel %vm56_vm0, %v751_v2, 0.0 }
 0x406   :  { %769 = vadd.xlane.f32.xlu1 %v768_v47  ;;  %766 = vadd.xlane.f32.xlu0 %v765_v42  ;;  %v774_v15 = vsel %vm56_vm0, %v750_v55, 0.0  ;;  %v771_v46 = vsel %vm56_vm0, %v749_v44, 0.0  ;;  %v752_v24 = vmul.f32 %v745_v36, %v1695_v60  ;;  %v786_v22 = vsel %vm56_vm0, %v754_v1, 0.0 }
 0x407   :  { %763 = vadd.xlane.f32.xlu2 %v762_v53  ;;  %v783_v6 = vsel %vm56_vm0, %v753_v4, 0.0  ;;  %v757_v10 = vmul.f32 %v745_v36, %v1726_v34  ;;  %v756_v13 = vmul.f32 %v745_v36, %v1731_v3  ;;  %v755_v14 = vmul.f32 %v745_v36, %v1718_v26 }
 0x408   :  { %v780_v8 = vsel %vm56_vm0, %v752_v24, 0.0  ;;  %v760_v20 = vmul.f32 %v745_v36, %v1747_v59  ;;  %v759_v21 = vmul.f32 %v745_v36, %v1752_v63  ;;  %v758_v27 = vmul.f32 %v745_v36, %v1739_v9 }
 0x409   :  { %v795_v17 = vsel %vm56_vm0, %v757_v10, 0.0  ;;  %v792_v18 = vsel %vm56_vm0, %v756_v13, 0.0  ;;  %v789_v19 = vsel %vm56_vm0, %v755_v14, 0.0  ;;  %v761_v35 = vmul.f32 %v745_v36, %v1757_v0 }
 0x40a   :  { %v804_v28 = vsel %vm56_vm0, %v760_v20, 0.0  ;;  %v801_v30 = vsel %vm56_vm0, %v759_v21, 0.0  ;;  %v798_v32 = vsel %vm56_vm0, %v758_v27, 0.0 }
 0x40b   :  { %v807_v57 = vsel %vm56_vm0, %v761_v35, 0.0 }
 0x40e   :  { %778 = vadd.xlane.f32.xlu1 %v777_v58  ;;  %775 = vadd.xlane.f32.xlu0 %v774_v15 }
 0x40f   :  { %772 = vadd.xlane.f32.xlu2 %v771_v46 }
 0x416   :  { %787 = vadd.xlane.f32.xlu1 %v786_v22  ;;  %784 = vadd.xlane.f32.xlu0 %v783_v6 }
 0x417   :  { %781 = vadd.xlane.f32.xlu2 %v780_v8 }
 0x41e   :  { %796 = vadd.xlane.f32.xlu1 %v795_v17  ;;  %793 = vadd.xlane.f32.xlu0 %v792_v18 }
 0x41f   :  { %790 = vadd.xlane.f32.xlu2 %v789_v19 }
 0x426   :  { %805 = vadd.xlane.f32.xlu1 %v804_v28  ;;  %802 = vadd.xlane.f32.xlu0 %v801_v30 }
 0x427   :  { %799 = vadd.xlane.f32.xlu2 %v798_v32 }
 0x42f   :  { %808 = vadd.xlane.f32.xlu2 %v807_v57 }
 0x479   :  { %v770_v38 = vpop.xlane.xlu1 %769  ;;  %v767_v45 = vpop.xlane.xlu0 %766 }
 0x47a   :  { %v1799_v47 = vsub.f32 %v1588_v48, %v770_v38  ;;  %v1802_v42 = vsub.f32 %v1581_v52, %v767_v45  ;;  %v764_v53 = vpop.xlane.xlu2 %763 }
 0x47b   :  { %v1805_v2 = vsub.f32 %v1575_v56, %v764_v53 }
 0x47c   :  { %v827_v55 = vmul.f32 %v1802_v42, %v1802_v42  ;;  %v828_v36 = vmul.f32 %v1799_v47, %v1799_v47 }
 0x47d   :  { %v826_v44 = vmul.f32 %v1805_v2, %v1805_v2 }
 0x47e   :  { %v845_v58 = vsel %vm56_vm0, %v827_v55, 0.0  ;;  %v848_v48 = vsel %vm56_vm0, %v828_v36, 0.0 }
 0x47f   :  { %846 = vadd.xlane.f32.xlu1 %v845_v58  ;;  %849 = vadd.xlane.f32.xlu2 %v848_v48  ;;  %v842_v52 = vsel %vm56_vm0, %v826_v44, 0.0 }
 0x480   :  { %843 = vadd.xlane.f32.xlu0 %v842_v52 }
 0x481   :  { %v779_v56 = vpop.xlane.xlu1 %778  ;;  %v776_v15 = vpop.xlane.xlu0 %775 }
 0x482   :  { %v1817_v46 = vsub.f32 %v1605_v11, %v779_v56  ;;  %v1820_v1 = vsub.f32 %v1599_v50, %v776_v15  ;;  %v773_v4 = vpop.xlane.xlu2 %772 }
 0x483   :  { %v1823_v24 = vsub.f32 %v1594_v5, %v773_v4 }
 0x484   :  { %v830_v22 = vmul.f32 %v1820_v1, %v1820_v1  ;;  %v831_v6 = vmul.f32 %v1817_v46, %v1817_v46 }
 0x485   :  { %v829_v8 = vmul.f32 %v1823_v24, %v1823_v24 }
 0x486   :  { %v854_v10 = vsel %vm56_vm0, %v830_v22, 0.0  ;;  %v857_v11 = vsel %vm56_vm0, %v831_v6, 0.0 }
 0x487   :  { %855 = vadd.xlane.f32.xlu1 %v854_v10  ;;  %858 = vadd.xlane.f32.xlu2 %v857_v11  ;;  %v851_v50 = vsel %vm56_vm0, %v829_v8, 0.0 }
 0x488   :  { %852 = vadd.xlane.f32.xlu0 %v851_v50 }
 0x489   :  { %v788_v5 = vpop.xlane.xlu1 %787  ;;  %v785_v13 = vpop.xlane.xlu0 %784 }
 0x48a   :  { %v1835_v14 = vsub.f32 %v1609_v31, %v788_v5  ;;  %v1838_v17 = vsub.f32 %v1635_v43, %v785_v13  ;;  %v782_v18 = vpop.xlane.xlu2 %781 }
 0x48b   :  { %v1841_v19 = vsub.f32 %v1617_v54, %v782_v18 }
 0x48c   :  { %v833_v20 = vmul.f32 %v1838_v17, %v1838_v17  ;;  %v834_v21 = vmul.f32 %v1835_v14, %v1835_v14 }
 0x48d   :  { %v832_v27 = vmul.f32 %v1841_v19, %v1841_v19 }
 0x48e   :  { %v863_v28 = vsel %vm56_vm0, %v833_v20, 0.0  ;;  %v866_v31 = vsel %vm56_vm0, %v834_v21, 0.0 }
 0x48f   :  { %864 = vadd.xlane.f32.xlu1 %v863_v28  ;;  %867 = vadd.xlane.f32.xlu2 %v866_v31  ;;  %v860_v43 = vsel %vm56_vm0, %v832_v27, 0.0 }
 0x490   :  { %861 = vadd.xlane.f32.xlu0 %v860_v43 }
 0x491   :  { %v797_v54 = vpop.xlane.xlu1 %796  ;;  %v794_v30 = vpop.xlane.xlu0 %793 }
 0x492   :  { %v1853_v32 = vsub.f32 %v1615_v16, %v797_v54  ;;  %v1856_v35 = vsub.f32 %v1641_v61, %v794_v30  ;;  %v791_v57 = vpop.xlane.xlu2 %790 }
 0x493   :  { %v1859_v38 = vsub.f32 %v1623_v37, %v791_v57 }
 0x494   :  { %v836_v45 = vmul.f32 %v1856_v35, %v1856_v35  ;;  %v837_v53 = vmul.f32 %v1853_v32, %v1853_v32 }
 0x495   :  { %v835_v55 = vmul.f32 %v1859_v38, %v1859_v38 }
 0x496   :  { %v872_v36 = vsel %vm56_vm0, %v836_v45, 0.0  ;;  %v875_v16 = vsel %vm56_vm0, %v837_v53, 0.0 }
 0x497   :  { %873 = vadd.xlane.f32.xlu1 %v872_v36  ;;  %876 = vadd.xlane.f32.xlu2 %v875_v16  ;;  %v869_v61 = vsel %vm56_vm0, %v835_v55, 0.0 }
 0x498   :  { %870 = vadd.xlane.f32.xlu0 %v869_v61 }
 0x499   :  { %v806_v37 = vpop.xlane.xlu1 %805  ;;  %v803_v44 = vpop.xlane.xlu0 %802 }
 0x49a   :  { %v1871_v58 = vsub.f32 %v1629_v23, %v806_v37  ;;  %v1874_v48 = vsub.f32 %v1648_v33, %v803_v44  ;;  %v800_v52 = vpop.xlane.xlu2 %799  ;;  %v1908_v44 = vld [vmem:[%s2099_s2] ss:$0 sm:$0xff] }
 0x49b   :  { %v1877_v56 = vsub.f32 %v1631_v25, %v800_v52 }
 0x49c   :  { %v839_v15 = vmul.f32 %v1874_v48, %v1874_v48  ;;  %v840_v4 = vmul.f32 %v1871_v58, %v1871_v58 }
 0x49d   :  { %v838_v22 = vmul.f32 %v1877_v56, %v1877_v56 }
 0x49e   :  { %v881_v6 = vsel %vm56_vm0, %v839_v15, 0.0  ;;  %v884_v23 = vsel %vm56_vm0, %v840_v4, 0.0 }
 0x49f   :  { %882 = vadd.xlane.f32.xlu1 %v881_v6  ;;  %885 = vadd.xlane.f32.xlu2 %v884_v23  ;;  %v878_v33 = vsel %vm56_vm0, %v838_v22, 0.0  ;;  %v1026_v22 = vmul.f32 %v1908_v44, %v1662_v40 }
 0x4a0   :  { %879 = vadd.xlane.f32.xlu0 %v878_v33 }
 0x4a2   :  { %v809_v25 = vpop.xlane.xlu2 %808 }
 0x4a3   :  { %v1889_v8 = vsub.f32 %v1646_v51, %v809_v25 }
 0x4a5   :  { %v841_v10 = vmul.f32 %v1889_v8, %v1889_v8 }
 0x4a7   :  { %v887_v11 = vsel %vm56_vm0, %v841_v10, 0.0  ;;  %v1042_v10 = vsel %vm56_vm0, %v1026_v22, 0.0 }
 0x4a8   :  { %888 = vadd.xlane.f32.xlu0 %v887_v11  ;;  %1043 = vadd.xlane.f32.xlu2 %v1042_v10  ;;  %v1030_v10 = vmul.f32 %v1908_v44, %v1680_v49 }
 0x4f2   :  { %v847_v50 = vpop.xlane.xlu1 %846  ;;  %v850_v5 = vpop.xlane.xlu2 %849 }
 0x4f3   :  { %v891_v13 = vmul.f32 %v847_v50, %v1657_v39  ;;  %v844_v18 = vpop.xlane.xlu0 %843  ;;  %v892_v51 = vmul.f32 %v850_v5, %v1667_v41 }
 0x4f4   :  { %v890_v20 = vmul.f32 %v844_v18, %v1662_v40 }
 0x4f5   :  { %v907_v21 = vsel %vm56_vm0, %v891_v13, 0.0  ;;  %v909_v30 = vsel %vm56_vm0, %v892_v51, 0.0 }
 0x4f6   :  { %v906_v27 = vsel %vm56_vm0, %v890_v20, 0.0 }
 0x4f7   :  { %v908_v28 = vadd.f32 %v907_v21, %v906_v27 }
 0x4f9   :  { %v910_v53 = vadd.f32 %v909_v30, %v908_v28  ;;  %v1028_v28 = vmul.f32 %v1908_v44, %v1667_v41  ;;  %v1027_v30 = vmul.f32 %v1908_v44, %v1657_v39 }
 0x4fa   :  { %v856_v31 = vpop.xlane.xlu1 %855  ;;  %v859_v43 = vpop.xlane.xlu2 %858 }
 0x4fb   :  { %v853_v54 = vpop.xlane.xlu0 %852  ;;  %v894_v57 = vmul.f32 %v856_v31, %v1680_v49  ;;  %v895_v61 = vmul.f32 %v859_v43, %v1687_v7 }
 0x4fc   :  { %v893_v45 = vmul.f32 %v853_v54, %v1673_v62  ;;  %v1029_v54 = vmul.f32 %v1908_v44, %v1673_v62 }
 0x4fd   :  { %v913_v16 = vsel %vm56_vm0, %v894_v57, 0.0  ;;  %v915_v6 = vsel %vm56_vm0, %v895_v61, 0.0 }
 0x4fe   :  { %v911_v55 = vsel %vm56_vm0, %v893_v45, 0.0  ;;  %v1048_v45 = vsel %vm56_vm0, %v1028_v28, 0.0 }
 0x4ff   :  { %v912_v36 = vadd.f32 %v911_v55, %v910_v53  ;;  %1049 = vadd.xlane.f32.xlu1 %v1048_v45  ;;  %v1051_v55 = vsel %vm56_vm0, %v1029_v54, 0.0  ;;  %v1035_v54 = vmul.f32 %v1908_v44, %v1718_v26 }
 0x500   :  { %1052 = vadd.xlane.f32.xlu2 %v1051_v55 }
 0x501   :  { %v914_v37 = vadd.f32 %v913_v16, %v912_v36  ;;  %v1045_v36 = vsel %vm56_vm0, %v1027_v30, 0.0  ;;  %v1033_v30 = vmul.f32 %v1908_v44, %v1710_v29 }
 0x502   :  { %v865_v52 = vpop.xlane.xlu1 %864  ;;  %v868_v15 = vpop.xlane.xlu2 %867  ;;  %1046 = vadd.xlane.f32.xlu0 %v1045_v36  ;;  %v1069_v36 = vsel %vm56_vm0, %v1035_v54, 0.0 }
 0x503   :  { %v862_v4 = vpop.xlane.xlu0 %861  ;;  %v897_v23 = vmul.f32 %v865_v52, %v1710_v29  ;;  %v916_v25 = vadd.f32 %v915_v6, %v914_v37  ;;  %v898_v5 = vmul.f32 %v868_v15, %v1705_v12  ;;  %v1031_v6 = vmul.f32 %v1908_v44, %v1687_v7 }
 0x504   :  { %v896_v33 = vmul.f32 %v862_v4, %v1695_v60 }
 0x505   :  { %v919_v13 = vsel %vm56_vm0, %v897_v23, 0.0  ;;  %v921_v21 = vsel %vm56_vm0, %v898_v5, 0.0  ;;  %v1057_v5 = vsel %vm56_vm0, %v1031_v6, 0.0  ;;  %v1036_v6 = vmul.f32 %v1908_v44, %v1731_v3 }
 0x506   :  { %v917_v11 = vsel %vm56_vm0, %v896_v33, 0.0 }
 0x507   :  { %v918_v50 = vadd.f32 %v917_v11, %v916_v25  ;;  %v1032_v25 = vmul.f32 %v1908_v44, %v1695_v60  ;;  %1058 = vadd.xlane.f32.xlu1 %v1057_v5 }
 0x509   :  { %v920_v18 = vadd.f32 %v919_v13, %v918_v50 }
 0x50a   :  { %v874_v20 = vpop.xlane.xlu1 %873  ;;  %v877_v51 = vpop.xlane.xlu2 %876 }
 0x50b   :  { %v871_v27 = vpop.xlane.xlu0 %870  ;;  %v900_v31 = vmul.f32 %v874_v20, %v1731_v3  ;;  %v922_v57 = vadd.f32 %v921_v21, %v920_v18  ;;  %v901_v61 = vmul.f32 %v877_v51, %v1726_v34  ;;  %v1060_v18 = vsel %vm56_vm0, %v1032_v25, 0.0 }
 0x50c   :  { %v899_v43 = vmul.f32 %v871_v27, %v1718_v26  ;;  %v1054_v20 = vsel %vm56_vm0, %v1030_v10, 0.0  ;;  %1061 = vadd.xlane.f32.xlu2 %v1060_v18  ;;  %v1072_v10 = vsel %vm56_vm0, %v1036_v6, 0.0 }
 0x50d   :  { %v925_v37 = vsel %vm56_vm0, %v900_v31, 0.0  ;;  %v927_v4 = vsel %vm56_vm0, %v901_v61, 0.0  ;;  %1055 = vadd.xlane.f32.xlu0 %v1054_v20 }
 0x50e   :  { %v923_v53 = vsel %vm56_vm0, %v899_v43, 0.0  ;;  %v1034_v43 = vmul.f32 %v1908_v44, %v1705_v12 }
 0x50f   :  { %v924_v16 = vadd.f32 %v923_v53, %v922_v57 }
 0x510   :  { %v1066_v55 = vsel %vm56_vm0, %v1034_v43, 0.0 }
 0x511   :  { %v926_v52 = vadd.f32 %v925_v37, %v924_v16  ;;  %v1063_v16 = vsel %vm56_vm0, %v1033_v30, 0.0  ;;  %1067 = vadd.xlane.f32.xlu1 %v1066_v55 }
 0x512   :  { %v883_v15 = vpop.xlane.xlu1 %882  ;;  %v886_v50 = vpop.xlane.xlu2 %885 }
 0x513   :  { %v880_v22 = vpop.xlane.xlu0 %879  ;;  %v903_v23 = vmul.f32 %v883_v15, %v1752_v63  ;;  %v928_v11 = vadd.f32 %v927_v4, %v926_v52  ;;  %v904_v51 = vmul.f32 %v886_v50, %v1747_v59  ;;  %v1037_v4 = vmul.f32 %v1908_v44, %v1726_v34 }
 0x514   :  { %v902_v33 = vmul.f32 %v880_v22, %v1739_v9  ;;  %1070 = vadd.xlane.f32.xlu2 %v1069_v36  ;;  %v1038_v22 = vmul.f32 %v1908_v44, %v1739_v9 }
 0x515   :  { %v931_v27 = vsel %vm56_vm0, %v903_v23, 0.0  ;;  %v933_v57 = vsel %vm56_vm0, %v904_v51, 0.0  ;;  %1064 = vadd.xlane.f32.xlu0 %v1063_v16 }
 0x516   :  { %v929_v13 = vsel %vm56_vm0, %v902_v33, 0.0  ;;  %v1075_v33 = vsel %vm56_vm0, %v1037_v4, 0.0  ;;  %v1078_v25 = vsel %vm56_vm0, %v1038_v22, 0.0 }
 0x517   :  { %v930_v21 = vadd.f32 %v929_v13, %v928_v11 }
 0x519   :  { %v932_v28 = vadd.f32 %v931_v27, %v930_v21  ;;  %1076 = vadd.xlane.f32.xlu1 %v1075_v33 }
 0x51b   :  { %v889_v31 = vpop.xlane.xlu0 %888  ;;  %v934_v53 = vadd.f32 %v933_v57, %v932_v28 }
 0x51c   :  { %v905_v45 = vmul.f32 %v889_v31, %v1757_v0  ;;  %1079 = vadd.xlane.f32.xlu2 %v1078_v25  ;;  %v955_v31 = vld [vmem:[%s2098_s1] sm:$0x1] }
 0x51d   :  { %1073 = vadd.xlane.f32.xlu0 %v1072_v10 }
 0x51e   :  { %v935_v61 = vsel %vm56_vm0, %v905_v45, 0.0 }
 0x51f   :  { %v936_v37 = vadd.f32 %v935_v61, %v934_v53 }
 0x521   :  { %v937_v52 = vrot.slane %v936_v37, 4 }
 0x523   :  { %v938_v15 = vadd.f32 %v937_v52, %v936_v37 }
 0x525   :  { %v939_v23 = vrot.slane %v938_v15, 2 }
 0x527   :  { %v940_v11 = vadd.f32 %v939_v23, %v938_v15 }
 0x529   :  { %v941_v50 = vrot.slane %v940_v11, 1 }
 0x52b   :  { %v942_v5 = vadd.f32 %v941_v50, %v940_v11 }
 0x52d   :  { %v943_v13 = vmul.f32 0.0078125, %v942_v5  ;;  %v1039_v5 = vmul.f32 %v1908_v44, %v1752_v63 }
 0x52f   :  { %v944_v18 = vadd.f32 1e-05, %v943_v13  ;;  %v1041_v13 = vmul.f32 %v1908_v44, %v1757_v0 }
 0x531   :  { %1281 = vrsqrt.f32 %v944_v18  ;;  %vm951_vm3 = vweird.f32 %v944_v18 }
 0x537   :  { %v1282_v20 = vpop.eup %1281 }
 0x538   :  { %v946_v21 = vmul.f32 %v1282_v20, %v944_v18  ;;  %vm952_vm2 = vweird.f32 %v1282_v20 }
 0x539   :  { %vm953_vm4 = vmor %vm951_vm3, %vm952_vm2 }
 0x53a   :  { %v947_v27 = vmul.f32 %v1282_v20, %v946_v21 }
 0x53c   :  { %v948_v51 = vmul.f32 0.5, %v947_v27  ;;  %v1044_v27 = vpop.xlane.xlu2 %1043 }
 0x53e   :  { %v949_v28 = vsub.f32 1.5, %v948_v51 }
 0x540   :  { %v950_v43 = vmul.f32 %v1282_v20, %v949_v28 }
 0x542   :  { %v954_v54 = vsel %vm953_vm4, %v1282_v20, %v950_v43  ;;  %v1081_v20 = vsel %vm56_vm0, %v1039_v5, 0.0 }
 0x543   :  { %v956_v30 = vmul.f32 %v955_v31, %v954_v54 }
 0x545   :  { %v957_v57 = vperm.slane %v956_v30, 0 }
 0x547   :  { %v960_v45 = vmul.f32 %v957_v57, %v1667_v41  ;;  %v959_v53 = vmul.f32 %v957_v57, %v1657_v39  ;;  %v958_v55 = vmul.f32 %v957_v57, %v1662_v40  ;;  %v963_v37 = vmul.f32 %v957_v57, %v1687_v7 }
 0x548   :  { %v962_v52 = vmul.f32 %v957_v57, %v1680_v49  ;;  %v961_v15 = vmul.f32 %v957_v57, %v1673_v62  ;;  %v966_v4 = vmul.f32 %v957_v57, %v1705_v12  ;;  %v965_v22 = vmul.f32 %v957_v57, %v1710_v29 }
 0x549   :  { %v980_v36 = vsel %vm56_vm0, %v960_v45, 0.0  ;;  %v977_v16 = vsel %vm56_vm0, %v959_v53, 0.0  ;;  %v974_v61 = vsel %vm56_vm0, %v958_v55, 0.0  ;;  %v989_v41 = vsel %vm56_vm0, %v963_v37, 0.0 }
 0x54a   :  { %981 = vadd.xlane.f32.xlu0 %v980_v36  ;;  %978 = vadd.xlane.f32.xlu2 %v977_v16  ;;  %v986_v39 = vsel %vm56_vm0, %v962_v52, 0.0  ;;  %v983_v40 = vsel %vm56_vm0, %v961_v15, 0.0  ;;  %v964_v6 = vmul.f32 %v957_v57, %v1695_v60  ;;  %v998_v7 = vsel %vm56_vm0, %v966_v4, 0.0 }
 0x54b   :  { %975 = vadd.xlane.f32.xlu1 %v974_v61  ;;  %v995_v49 = vsel %vm56_vm0, %v965_v22, 0.0  ;;  %v969_v23 = vmul.f32 %v957_v57, %v1726_v34  ;;  %v968_v33 = vmul.f32 %v957_v57, %v1731_v3  ;;  %v967_v25 = vmul.f32 %v957_v57, %v1718_v26 }
 0x54c   :  { %v992_v62 = vsel %vm56_vm0, %v964_v6, 0.0  ;;  %v972_v10 = vmul.f32 %v957_v57, %v1747_v59  ;;  %v971_v11 = vmul.f32 %v957_v57, %v1752_v63  ;;  %v970_v50 = vmul.f32 %v957_v57, %v1739_v9 }
 0x54d   :  { %v1007_v12 = vsel %vm56_vm0, %v969_v23, 0.0  ;;  %v1004_v29 = vsel %vm56_vm0, %v968_v33, 0.0  ;;  %v1001_v60 = vsel %vm56_vm0, %v967_v25, 0.0  ;;  %v973_v18 = vmul.f32 %v957_v57, %v1757_v0 }
 0x54e   :  { %v1016_v34 = vsel %vm56_vm0, %v972_v10, 0.0  ;;  %v1013_v3 = vsel %vm56_vm0, %v971_v11, 0.0  ;;  %v1010_v26 = vsel %vm56_vm0, %v970_v50, 0.0  ;;  %v1087_v9 = vsel %vm56_vm0, %v1041_v13, 0.0 }
 0x54f   :  { %v1019_v21 = vsel %vm56_vm0, %v973_v18, 0.0  ;;  %v1040_v63 = vmul.f32 %v1908_v44, %v1747_v59 }
 0x551   :  { %v1084_v0 = vsel %vm56_vm0, %v1040_v63, 0.0 }
 0x552   :  { %990 = vadd.xlane.f32.xlu0 %v989_v41  ;;  %987 = vadd.xlane.f32.xlu2 %v986_v39 }
 0x553   :  { %984 = vadd.xlane.f32.xlu1 %v983_v40 }
 0x55a   :  { %999 = vadd.xlane.f32.xlu0 %v998_v7  ;;  %996 = vadd.xlane.f32.xlu2 %v995_v49 }
 0x55b   :  { %993 = vadd.xlane.f32.xlu1 %v992_v62 }
 0x562   :  { %1008 = vadd.xlane.f32.xlu0 %v1007_v12  ;;  %1005 = vadd.xlane.f32.xlu2 %v1004_v29 }
 0x563   :  { %1002 = vadd.xlane.f32.xlu1 %v1001_v60 }
 0x56a   :  { %1017 = vadd.xlane.f32.xlu0 %v1016_v34  ;;  %1014 = vadd.xlane.f32.xlu2 %v1013_v3 }
 0x56b   :  { %1011 = vadd.xlane.f32.xlu1 %v1010_v26 }
 0x572   :  { %1082 = vadd.xlane.f32.xlu0 %v1081_v20  ;;  %1088 = vadd.xlane.f32.xlu2 %v1087_v9  ;;  %v1050_v31 = vpop.xlane.xlu1 %1049 }
 0x573   :  { %1020 = vadd.xlane.f32.xlu1 %v1019_v21  ;;  %v1053_v28 = vpop.xlane.xlu2 %1052 }
 0x575   :  { %v1047_v51 = vpop.xlane.xlu0 %1046 }
 0x57a   :  { %v1059_v30 = vpop.xlane.xlu1 %1058 }
 0x57b   :  { %1085 = vadd.xlane.f32.xlu1 %v1084_v0 }
 0x57f   :  { %v1062_v54 = vpop.xlane.xlu2 %1061 }
 0x580   :  { %v1056_v43 = vpop.xlane.xlu0 %1055 }
 0x584   :  { %v1068_v53 = vpop.xlane.xlu1 %1067 }
 0x587   :  { %v1071_v45 = vpop.xlane.xlu2 %1070 }
 0x588   :  { %v1065_v57 = vpop.xlane.xlu0 %1064 }
 0x58c   :  { %v1077_v16 = vpop.xlane.xlu1 %1076 }
 0x58f   :  { %v1080_v36 = vpop.xlane.xlu2 %1079 }
 0x590   :  { %v1074_v55 = vpop.xlane.xlu0 %1073 }
 0x5bd   :  { %v982_v59 = vpop.xlane.xlu0 %981  ;;  %v979_v44 = vpop.xlane.xlu2 %978 }
 0x5be   :  { %v1092_v61 = vmul.f32 %v982_v59, %v1799_v47  ;;  %v976_v37 = vpop.xlane.xlu1 %975  ;;  %v1091_v52 = vmul.f32 %v979_v44, %v1802_v42 }
 0x5bf   :  { %v1090_v15 = vmul.f32 %v976_v37, %v1805_v2 }
 0x5c0   :  { %v1108_v41 = vadd.f32 %v1092_v61, %v1050_v31  ;;  %v1107_v39 = vadd.f32 %v1091_v52, %v1047_v51 }
 0x5c1   :  { %v1106_v40 = vadd.f32 %v1090_v15, %v1044_v27 }
 0x5c2   :  { %1124 = vst.msk [vmem:[%s2101_s4 + $0x10] sm:$0xff] %vm56_vm0, %v1108_v41 }
 0x5c3   :  { %1122 = vst.msk [vmem:[%s2101_s4] sm:$0xff] %vm56_vm0, %v1106_v40 }
 0x5c4   :  { %1123 = vst.msk [vmem:[%s2101_s4 + $0x8] sm:$0xff] %vm56_vm0, %v1107_v39 }
 0x5c5   :  { %v991_v47 = vpop.xlane.xlu0 %990  ;;  %v988_v42 = vpop.xlane.xlu2 %987 }
 0x5c6   :  { %v1095_v2 = vmul.f32 %v991_v47, %v1817_v46  ;;  %v985_v4 = vpop.xlane.xlu1 %984  ;;  %v1094_v22 = vmul.f32 %v988_v42, %v1820_v1 }
 0x5c7   :  { %v1093_v6 = vmul.f32 %v985_v4, %v1823_v24 }
 0x5c8   :  { %v1111_v7 = vadd.f32 %v1095_v2, %v1059_v30  ;;  %v1110_v49 = vadd.f32 %v1094_v22, %v1056_v43 }
 0x5c9   :  { %v1109_v62 = vadd.f32 %v1093_v6, %v1053_v28 }
 0x5ca   :  { %1127 = vst.msk [vmem:[%s2101_s4 + $0x28] sm:$0xff] %vm56_vm0, %v1111_v7 }
 0x5cb   :  { %1125 = vst.msk [vmem:[%s2101_s4 + $0x18] sm:$0xff] %vm56_vm0, %v1109_v62 }
 0x5cc   :  { %1126 = vst.msk [vmem:[%s2101_s4 + $0x20] sm:$0xff] %vm56_vm0, %v1110_v49 }
 0x5cd   :  { %v1000_v46 = vpop.xlane.xlu0 %999  ;;  %v997_v1 = vpop.xlane.xlu2 %996 }
 0x5ce   :  { %v1098_v24 = vmul.f32 %v1000_v46, %v1835_v14  ;;  %v994_v23 = vpop.xlane.xlu1 %993  ;;  %v1097_v33 = vmul.f32 %v997_v1, %v1838_v17 }
 0x5cf   :  { %v1096_v25 = vmul.f32 %v994_v23, %v1841_v19 }
 0x5d0   :  { %v1114_v12 = vadd.f32 %v1098_v24, %v1068_v53  ;;  %v1113_v29 = vadd.f32 %v1097_v33, %v1065_v57 }
 0x5d1   :  { %v1112_v60 = vadd.f32 %v1096_v25, %v1062_v54 }
 0x5d2   :  { %1130 = vst.msk [vmem:[%s2101_s4 + $0x40] sm:$0xff] %vm56_vm0, %v1114_v12 }
 0x5d3   :  { %1128 = vst.msk [vmem:[%s2101_s4 + $0x30] sm:$0xff] %vm56_vm0, %v1112_v60 }
 0x5d4   :  { %1129 = vst.msk [vmem:[%s2101_s4 + $0x38] sm:$0xff] %vm56_vm0, %v1113_v29 }
 0x5d5   :  { %v1009_v14 = vpop.xlane.xlu0 %1008  ;;  %v1006_v17 = vpop.xlane.xlu2 %1005 }
 0x5d6   :  { %v1101_v19 = vmul.f32 %v1009_v14, %v1853_v32  ;;  %v1003_v10 = vpop.xlane.xlu1 %1002  ;;  %v1100_v11 = vmul.f32 %v1006_v17, %v1856_v35 }
 0x5d7   :  { %v1099_v50 = vmul.f32 %v1003_v10, %v1859_v38 }
 0x5d8   :  { %v1117_v34 = vadd.f32 %v1101_v19, %v1077_v16  ;;  %v1116_v3 = vadd.f32 %v1100_v11, %v1074_v55 }
 0x5d9   :  { %v1115_v26 = vadd.f32 %v1099_v50, %v1071_v45 }
 0x5da   :  { %1133 = vst.msk [vmem:[%s2101_s4 + $0x58] sm:$0xff] %vm56_vm0, %v1117_v34 }
 0x5db   :  { %1131 = vst.msk [vmem:[%s2101_s4 + $0x48] sm:$0xff] %vm56_vm0, %v1115_v26 }
 0x5dc   :  { %1132 = vst.msk [vmem:[%s2101_s4 + $0x50] sm:$0xff] %vm56_vm0, %v1116_v3 }
 0x5dd   :  { %v1018_v32 = vpop.xlane.xlu0 %1017  ;;  %v1015_v38 = vpop.xlane.xlu2 %1014 }
 0x5de   :  { %v1012_v35 = vpop.xlane.xlu1 %1011  ;;  %v1103_v18 = vmul.f32 %v1015_v38, %v1874_v48  ;;  %v1104_v27 = vmul.f32 %v1018_v32, %v1871_v58 }
 0x5df   :  { %v1102_v5 = vmul.f32 %v1012_v35, %v1877_v56 }
 0x5e1   :  { %v1118_v13 = vadd.f32 %v1102_v5, %v1080_v36 }
 0x5e3   :  { %1134 = vst.msk [vmem:[%s2101_s4 + $0x60] sm:$0xff] %vm56_vm0, %v1118_v13 }
 0x5e5   :  { %v1083_v20 = vpop.xlane.xlu0 %1082  ;;  %v1089_v63 = vpop.xlane.xlu2 %1088 }
 0x5e6   :  { %v1119_v9 = vadd.f32 %v1103_v18, %v1083_v20  ;;  %v1021_v21 = vpop.xlane.xlu1 %1020 }
 0x5e7   :  { %v1105_v0 = vmul.f32 %v1021_v21, %v1889_v8 }
 0x5e8   :  { %1135 = vst.msk [vmem:[%s2101_s4 + $0x68] sm:$0xff] %vm56_vm0, %v1119_v9 }
 0x5e9   :  { %v1121_v56 = vadd.f32 %v1105_v0, %v1089_v63 }
 0x5eb   :  { %1137 = vst.msk [vmem:[%s2101_s4 + $0x78] sm:$0xff] %vm56_vm0, %v1121_v56 }
 0x5ee   :  { %v1086_v48 = vpop.xlane.xlu1 %1085 }
 0x5ef   :  { %v1120_v51 = vadd.f32 %v1104_v27, %v1086_v48 }
 0x5f1   :  { %1136 = vst.msk [vmem:[%s2101_s4 + $0x70] sm:$0xff] %vm56_vm0, %v1120_v51 }
 0x5f2   :  { %1307 = dma.done.wait [#allocation4], 2048  }
 0x5f3   :  { %1308 = vsyncadd [#allocation4], 4294965248 }
 0x5f4   :  { %1159 = vsyncpa [#allocation4], 1 }

</bundles_post_ra>
